<compile_context>
chip_gen: v7x
topology: tpu7x:2x2x1
jax: 0.10.0
libtpu: 0.0.40
codegen_flags: <defaults>
</compile_context>

<pallas_src>
import jax
import jax.numpy as jnp
import numpy as np
from jax.experimental import pallas as pl
from jax.experimental.pallas import tpu as pltpu


def _round_up(a, b):
    return (a + b - 1) // b * b


# ------------------------------------------------------------------
# Kernel 1: fused head  cbr0 -> classifier[ConvBNReLU6 -> Dropout2d(identity) -> Conv]
#   per M-tile:  h0 = relu6(x @ W0 + b0); h1 = relu6(h0 @ W1 + b1); out = h1 @ W2p
#   (BN scales folded into W0/W1 columns; W2p zero-padded to 128 output lanes.)
# ------------------------------------------------------------------
def _head_kernel(x_ref, w0_ref, b0_ref, w1_ref, b1_ref, w2_ref, o_ref):
    h = jnp.dot(x_ref[...], w0_ref[...], preferred_element_type=jnp.float32)
    h = jnp.clip(h + b0_ref[...], 0.0, 6.0)                       # cbr0: ConvBNReLU6
    h = jnp.dot(h.astype(jnp.bfloat16), w1_ref[...],
                preferred_element_type=jnp.float32)
    h = jnp.clip(h + b1_ref[...], 0.0, 6.0)                       # classifier[0]: ConvBNReLU6
    # Dropout2d(p=0.1) -> identity (inference); final 1x1 conv, bias=False
    o_ref[...] = jnp.dot(h.astype(jnp.bfloat16), w2_ref[...],
                         preferred_element_type=jnp.float32).astype(o_ref.dtype)


def fused_head(x2d, w0, b0, w1, b1, w2p):
    """x2d: (M, Cin) bf16 -> (M, Cout_padded) f32, lane-dense output."""
    M, Cin = x2d.shape
    Cmid = w0.shape[1]
    CoutP = w2p.shape[1]

    Mp = _round_up(M, 16)                 # bf16 sublane packing
    tm = min(512, Mp)                     # large M-tile amortizes per-grid-step overhead
    Mp = _round_up(Mp, tm)                # pad so the grid covers every row (no dropped tail)
    if Mp != M:
        x2d = jnp.pad(x2d, ((0, Mp - M), (0, 0)))

    out = pl.pallas_call(
        _head_kernel,
        out_shape=jax.ShapeDtypeStruct((Mp, CoutP), jnp.float32),
        grid=(Mp // tm,),
        in_specs=[
            pl.BlockSpec((tm, Cin), lambda i: (i, 0)),
            pl.BlockSpec((Cin, Cmid), lambda i: (0, 0)),    # weights: constant block
            pl.BlockSpec((1, Cmid), lambda i: (0, 0)),      #   index -> stay resident
            pl.BlockSpec((Cmid, Cmid), lambda i: (0, 0)),
            pl.BlockSpec((1, Cmid), lambda i: (0, 0)),
            pl.BlockSpec((Cmid, CoutP), lambda i: (0, 0)),
        ],
        out_specs=pl.BlockSpec((tm, CoutP), lambda i: (i, 0)),
        compiler_params=pltpu.CompilerParams(dimension_semantics=("parallel",)),
    )(x2d, w0, b0, w1, b1, w2p)
    return out[:M]


# ------------------------------------------------------------------
# Kernel 2: composed bilinear resize (align_corners=True), batched over planes.
#   out[p] = Mh @ plane[p] @ Mw^T   with Mh/Mw the product of the two resize matrices.
# ------------------------------------------------------------------
def _bilinear_kernel(x_ref, mh_ref, mwt_ref, o_ref):
    x = x_ref[...]                                    # (P, Hin, Win)
    P = x.shape[0]
    mwt_b = jnp.broadcast_to(mwt_ref[...], (P,) + mwt_ref.shape)   # (P, Win, Wout)
    tmp = jnp.einsum('pij,pjw->piw', x, mwt_b, preferred_element_type=jnp.float32)
    mh_b = jnp.broadcast_to(mh_ref[...], (P,) + mh_ref.shape)      # (P, Hout, Hin)
    out = jnp.einsum('phi,piw->phw', mh_b, tmp, preferred_element_type=jnp.float32)
    o_ref[...] = out.astype(o_ref.dtype)


def bilinear_resize_planes(planes, mh, mwt):
    """planes: (NC, Hin, Win); mh: (Hout, Hin); mwt: (Win, Wout) -> (NC, Hout, Wout)."""
    NC, Hin, Win = planes.shape
    Hout, Wout = mh.shape[0], mwt.shape[1]

    # planes per grid step: keep the f32 output block (double-buffered) modest.
    max_p = max(1, (4 << 20) // (Hout * Wout * 4))
    P = max(1, min(NC, 8, max_p))
    NCp = _round_up(NC, P)
    if NCp != NC:
        planes = jnp.pad(planes, ((0, NCp - NC), (0, 0), (0, 0)))

    out = pl.pallas_call(
        _bilinear_kernel,
        out_shape=jax.ShapeDtypeStruct((NCp, Hout, Wout), planes.dtype),
        grid=(NCp // P,),
        in_specs=[
            pl.BlockSpec((P, Hin, Win), lambda i: (i, 0, 0)),
            pl.BlockSpec((Hout, Hin), lambda i: (0, 0)),
            pl.BlockSpec((Win, Wout), lambda i: (0, 0)),
        ],
        out_specs=pl.BlockSpec((P, Hout, Wout), lambda i: (i, 0, 0)),
        compiler_params=pltpu.CompilerParams(dimension_semantics=("parallel",)),
    )(planes, mh, mwt)
    return out[:NC]


# ------------------------------------------------------------------
# Bilinear interpolation matrix (align_corners=True), built in numpy (static).
# ------------------------------------------------------------------
def _interp_matrix_np(out_size, in_size):
    if out_size == 1 or in_size == 1:
        src = np.zeros((out_size,), np.float32)
    else:
        src = np.arange(out_size, dtype=np.float32) * ((in_size - 1) / (out_size - 1))
    i0 = np.clip(np.floor(src).astype(np.int32), 0, in_size - 1)
    i1 = np.minimum(i0 + 1, in_size - 1)
    frac = (src - i0).astype(np.float32)
    m = np.zeros((out_size, in_size), np.float32)
    rows = np.arange(out_size)
    np.add.at(m, (rows, i0), 1.0 - frac)
    np.add.at(m, (rows, i1), frac)
    return m


# ------------------------------------------------------------------
# Parameters (deterministic synthetic init — no checkpoint loading)
# ------------------------------------------------------------------
def _bn_params(key, c):
    k1, k2, k3, k4 = jax.random.split(key, 4)
    gamma = 1.0 + 0.1 * jax.random.normal(k1, (c,), jnp.float32)
    beta = 0.1 * jax.random.normal(k2, (c,), jnp.float32)
    mean = 0.1 * jax.random.normal(k3, (c,), jnp.float32)
    var = jnp.abs(jax.random.normal(k4, (c,), jnp.float32)) + 0.5
    return gamma, beta, mean, var


def _bn_fuse(bn, eps=1e-5):
    gamma, beta, mean, var = bn
    scale = gamma / jnp.sqrt(var + eps)
    bias = beta - mean * scale
    return scale, bias


def init_params(key, in_channels=3, num_classes=7):
    ks = jax.random.split(key, 8)

    def w(k, cin, cout):
        return jax.random.normal(k, (cin, cout), jnp.float32) * (1.0 / np.sqrt(cin))

    return {
        # stand-in backbone (stride-32, 2048-channel output like ResNet-50 layer4)
        "b4_w": w(ks[0], in_channels, 2048), "b4_bn": _bn_params(ks[1], 2048),
        # cbr0: ConvBNReLU6(2048 -> 256, k=1)
        "cbr0_w": w(ks[2], 2048, 256), "cbr0_bn": _bn_params(ks[3], 256),
        # classifier: ConvBNReLU6(256 -> 256), Dropout2d (identity), Conv(256 -> num_classes)
        "cls0_w": w(ks[4], 256, 256), "cls0_bn": _bn_params(ks[5], 256),
        "cls2_w": w(ks[6], 256, num_classes),
    }


def _prepare_head(params):
    """Fold BN into the 1x1-conv weights, cast to bf16, pad final Cout to 128 lanes."""
    s0, b0 = _bn_fuse(params["cbr0_bn"])
    s1, b1 = _bn_fuse(params["cls0_bn"])
    w0 = (params["cbr0_w"] * s0[None, :]).astype(jnp.bfloat16)
    w1 = (params["cls0_w"] * s1[None, :]).astype(jnp.bfloat16)
    w2 = params["cls2_w"]
    cout_p = _round_up(w2.shape[1], 128)
    w2p = jnp.pad(w2, ((0, 0), (0, cout_p - w2.shape[1]))).astype(jnp.bfloat16)
    return w0, b0[None, :], w1, b1[None, :], w2p


def backbone_standin_x4(params, x_nchw):
    # TODO(synk): ResNet_50 was not provided; deterministic stand-in (plain XLA — Cin=3
    # is far too small to feed the MXU usefully from a Pallas kernel).
    x4_in = jnp.transpose(x_nchw[:, :, ::32, ::32], (0, 2, 3, 1)).astype(jnp.float32)
    s, b = _bn_fuse(params["b4_bn"])
    x4 = jnp.einsum('nhwc,cd->nhwd', x4_in, params["b4_w"]) * s + b
    return jnp.clip(x4, 0.0, 6.0)                      # (N, H/32, W/32, 2048)


# ------------------------------------------------------------------
# Mynet forward
# ------------------------------------------------------------------
def mynet_forward(params, x_nchw):
    N, _, H, W = x_nchw.shape
    num_classes = params["cls2_w"].shape[1]

    # x2 (stride-8 branch) is only used for its spatial size in the reference forward;
    # compute the size statically instead of running that branch (dead compute removed).
    h2, w2 = -(-H // 8), -(-W // 8)

    x4 = backbone_standin_x4(params, x_nchw)
    n, h4, w4, cin = x4.shape

    # --- fused cbr0 + classifier head: one pallas_call, lane-dense padded output ---
    w0, b0, w1, b1, w2p = _prepare_head(params)
    out2d = fused_head(x4.reshape(-1, cin).astype(jnp.bfloat16), w0, b0, w1, b1, w2p)
    out = out2d[:, :num_classes].reshape(N, h4, w4, num_classes)
    out = jnp.transpose(out, (0, 3, 1, 2)).reshape(N * num_classes, h4, w4)

    # --- composed bilinear upsample (align_corners=True): (h4,w4)->(h2,w2)->(H,W) ---
    mh = _interp_matrix_np(H, h2) @ _interp_matrix_np(h2, h4)     # (H, h4)
    mw = _interp_matrix_np(W, w2) @ _interp_matrix_np(w2, w4)     # (W, w4)
    out = bilinear_resize_planes(out, jnp.asarray(mh), jnp.asarray(mw.T))
    return out.reshape(N, num_classes, H, W)


if __name__ == "__main__":
    key = jax.random.PRNGKey(0)
    kx, kp = jax.random.split(key)

    N, C, H, W = 2, 3, 64, 64   # H, W divisible by 32 for the /32 branch
    x = jax.random.normal(kx, (N, C, H, W), jnp.float32)
    params = init_params(kp, in_channels=C, num_classes=7)

    out = jax.block_until_ready(mynet_forward(params, x))

    assert out.shape == (N, 7, H, W), out.shape
    assert jnp.all(jnp.isfinite(out))
    print("KERNEL_OK")
</pallas_src>

<mosaic_0001>
module attributes {stable_mosaic.version = 11 : i64} {
  func.func @_head_kernel(%arg0: i32, %arg1: memref<16x2048xbf16, #tpu.memory_space<vmem>>, %arg2: memref<2048x256xbf16, #tpu.memory_space<vmem>>, %arg3: memref<1x256xf32, #tpu.memory_space<vmem>>, %arg4: memref<256x256xbf16, #tpu.memory_space<vmem>>, %arg5: memref<1x256xf32, #tpu.memory_space<vmem>>, %arg6: memref<256x128xbf16, #tpu.memory_space<vmem>>, %arg7: memref<16x128xf32, #tpu.memory_space<vmem>>) attributes {dimension_semantics = [#tpu.dimension_semantics<parallel>], iteration_bounds = array<i64: 1>, scalar_prefetch = 0 : i64, scratch_operands = 0 : i64, tpu.core_type = #tpu.core_type<tc>, window_params = [{transform_indices = @transform_0, window_bounds = array<i64: 16, 2048>}, {pipeline_mode = #tpu.pipeline_mode<synchronous>, transform_indices = @transform_1, window_bounds = array<i64: 2048, 256>}, {pipeline_mode = #tpu.pipeline_mode<synchronous>, transform_indices = @transform_2, window_bounds = array<i64: 1, 256>}, {pipeline_mode = #tpu.pipeline_mode<synchronous>, transform_indices = @transform_3, window_bounds = array<i64: 256, 256>}, {pipeline_mode = #tpu.pipeline_mode<synchronous>, transform_indices = @transform_4, window_bounds = array<i64: 1, 256>}, {pipeline_mode = #tpu.pipeline_mode<synchronous>, transform_indices = @transform_5, window_bounds = array<i64: 256, 128>}, {transform_indices = @transform_6, window_bounds = array<i64: 16, 128>}]} {
    %c0 = arith.constant 0 : index
    %c0_0 = arith.constant 0 : index
    %0 = vector.load %arg1[%c0, %c0_0] : memref<16x2048xbf16, #tpu.memory_space<vmem>>, vector<16x2048xbf16>
    %c0_1 = arith.constant 0 : index
    %c0_2 = arith.constant 0 : index
    %1 = vector.load %arg2[%c0_1, %c0_2] : memref<2048x256xbf16, #tpu.memory_space<vmem>>, vector<2048x256xbf16>
    %cst = arith.constant dense<0.000000e+00> : vector<16x256xf32>
    %2 = tpu.matmul %0, %1, %cst {dimension_numbers = #tpu.dot_dimension_numbers<[1], [0], [0], [1], [0, 0, 1, 1], [], []>} : vector<16x2048xbf16>, vector<2048x256xbf16>, vector<16x256xf32> -> vector<16x256xf32>
    %c0_3 = arith.constant 0 : index
    %c0_4 = arith.constant 0 : index
    %3 = vector.load %arg3[%c0_3, %c0_4] : memref<1x256xf32, #tpu.memory_space<vmem>>, vector<1x256xf32>
    %4 = vector.broadcast %3 : vector<1x256xf32> to vector<16x256xf32>
    %5 = arith.addf %2, %4 : vector<16x256xf32>
    %cst_5 = arith.constant 0.000000e+00 : f32
    %cst_6 = arith.constant 6.000000e+00 : f32
    %6 = vector.broadcast %cst_5 : f32 to vector<16x256xf32>
    %7 = arith.maximumf %6, %5 : vector<16x256xf32>
    %8 = vector.broadcast %cst_6 : f32 to vector<16x256xf32>
    %9 = arith.minimumf %8, %7 : vector<16x256xf32>
    %10 = arith.truncf %9 : vector<16x256xf32> to vector<16x256xbf16>
    %c0_7 = arith.constant 0 : index
    %c0_8 = arith.constant 0 : index
    %11 = vector.load %arg4[%c0_7, %c0_8] : memref<256x256xbf16, #tpu.memory_space<vmem>>, vector<256x256xbf16>
    %cst_9 = arith.constant dense<0.000000e+00> : vector<16x256xf32>
    %12 = tpu.matmul %10, %11, %cst_9 {dimension_numbers = #tpu.dot_dimension_numbers<[1], [0], [0], [1], [0, 0, 1, 1], [], []>} : vector<16x256xbf16>, vector<256x256xbf16>, vector<16x256xf32> -> vector<16x256xf32>
    %c0_10 = arith.constant 0 : index
    %c0_11 = arith.constant 0 : index
    %13 = vector.load %arg5[%c0_10, %c0_11] : memref<1x256xf32, #tpu.memory_space<vmem>>, vector<1x256xf32>
    %14 = vector.broadcast %13 : vector<1x256xf32> to vector<16x256xf32>
    %15 = arith.addf %12, %14 : vector<16x256xf32>
    %cst_12 = arith.constant 0.000000e+00 : f32
    %cst_13 = arith.constant 6.000000e+00 : f32
    %16 = vector.broadcast %cst_12 : f32 to vector<16x256xf32>
    %17 = arith.maximumf %16, %15 : vector<16x256xf32>
    %18 = vector.broadcast %cst_13 : f32 to vector<16x256xf32>
    %19 = arith.minimumf %18, %17 : vector<16x256xf32>
    %20 = arith.truncf %19 : vector<16x256xf32> to vector<16x256xbf16>
    %c0_14 = arith.constant 0 : index
    %c0_15 = arith.constant 0 : index
    %21 = vector.load %arg6[%c0_14, %c0_15] : memref<256x128xbf16, #tpu.memory_space<vmem>>, vector<256x128xbf16>
    %cst_16 = arith.constant dense<0.000000e+00> : vector<16x128xf32>
    %22 = tpu.matmul %20, %21, %cst_16 {dimension_numbers = #tpu.dot_dimension_numbers<[1], [0], [0], [1], [0, 0, 1, 1], [], []>} : vector<16x256xbf16>, vector<256x128xbf16>, vector<16x128xf32> -> vector<16x128xf32>
    %c0_17 = arith.constant 0 : index
    %c0_18 = arith.constant 0 : index
    %23 = vector.load %arg7[%c0_17, %c0_18] : memref<16x128xf32, #tpu.memory_space<vmem>>, vector<16x128xf32>
    tpu.vector_store %arg7[%c0_17, %c0_18], %22 {strides = array<i32>} : memref<16x128xf32, #tpu.memory_space<vmem>>, vector<16x128xf32>,
    return
  }
  func.func @transform_0(%arg0: i32) -> (i32, i32) {
    %c0_i32 = arith.constant 0 : i32
    %c0_i32_0 = arith.constant 0 : i32
    return %arg0, %c0_i32 : i32, i32
  }
  func.func @transform_1(%arg0: i32) -> (i32, i32) {
    %c0_i32 = arith.constant 0 : i32
    %c0_i32_0 = arith.constant 0 : i32
    %c0_i32_1 = arith.constant 0 : i32
    return %c0_i32, %c0_i32_0 : i32, i32
  }
  func.func @transform_2(%arg0: i32) -> (i32, i32) {
    %c0_i32 = arith.constant 0 : i32
    %c0_i32_0 = arith.constant 0 : i32
    %c0_i32_1 = arith.constant 0 : i32
    return %c0_i32, %c0_i32_0 : i32, i32
  }
  func.func @transform_3(%arg0: i32) -> (i32, i32) {
    %c0_i32 = arith.constant 0 : i32
    %c0_i32_0 = arith.constant 0 : i32
    %c0_i32_1 = arith.constant 0 : i32
    return %c0_i32, %c0_i32_0 : i32, i32
  }
  func.func @transform_4(%arg0: i32) -> (i32, i32) {
    %c0_i32 = arith.constant 0 : i32
    %c0_i32_0 = arith.constant 0 : i32
    %c0_i32_1 = arith.constant 0 : i32
    return %c0_i32, %c0_i32_0 : i32, i32
  }
  func.func @transform_5(%arg0: i32) -> (i32, i32) {
    %c0_i32 = arith.constant 0 : i32
    %c0_i32_0 = arith.constant 0 : i32
    %c0_i32_1 = arith.constant 0 : i32
    return %c0_i32, %c0_i32_0 : i32, i32
  }
  func.func @transform_6(%arg0: i32) -> (i32, i32) {
    %c0_i32 = arith.constant 0 : i32
    %c0_i32_0 = arith.constant 0 : i32
    return %arg0, %c0_i32 : i32, i32
  }
}

</mosaic_0001>

<bundles_post_ra>
// kernel: tpu_custom_call.1
= control target key start
LH: loop header
LB: loop body
LE: loop exit
PB: predicated region body
PF: predicated region fallthrough
CT: control target
= control target key end

     0   :  { %11 = vsyncpa [#allocation3], 0  ;;  %s3657_s0 = inlined_call_operand.hbm [shape: bf16[16,2048], index: 0, kind: input, shape index: {}]   ;;  %s3658_s1 = inlined_call_operand.hbm [shape: bf16[2048,256], index: 1, kind: input, shape index: {}]   ;;  %s3659_s2 = inlined_call_operand.vmem [shape: f32[1,256], index: 2, kind: input, shape index: {}]   ;;  %s3660_s3 = inlined_call_operand.hbm [shape: bf16[256,256], index: 3, kind: input, shape index: {}]   ;;  %s3661_s4 = inlined_call_operand.vmem [shape: f32[1,256], index: 4, kind: input, shape index: {}]   ;;  %s3662_s5 = inlined_call_operand.hbm [shape: bf16[256,128], index: 5, kind: input, shape index: {}]   ;;  %s3663_s6 = inlined_call_operand.hbm [shape: f32[16,128], index: 6, kind: output, shape index: {}]  }
   0x1   :  { %12 = vsyncpa [#allocation6], 0 }
   0x2   :  { %13 = vsyncpa [#allocation9], 0 }
   0x3   :  { %14 = vsyncpa [#allocation4], 0  ;;  %s3475_s21 = smov [#allocation5]   ;;  %s3357_s25 = scalar_lea.hbm %s3658_s1, 32768 }
   0x4   :  { %s32_s22 = sshll.u32 %s3475_s21, 4  ;;  %p3358_p0 = scmp.ne.s32.totalorder %s3658_s1, %s3357_s25  ;;  %s33_s22 = int_to_ptr.vmem [resolvable:$true] %s32_s22 }
   0x5   :  { %p3361_p1 = scmp.lt.u32.totalorder %s3357_s25, %s3658_s1 }
   0x7   :  { %p3363_p2 = pnand %p3361_p1, %p3358_p0 }
   0x9   :  { %3366 = shalt.err (!%p3363_p2)
}
   0xa   :  { %s3367_s30 = scalar_lea.vmem %s33_s22, 32768  ;;  %p3372_p4 = scmp.lt.s32.totalorder %s33_s22, %s33_s22 }
   0xb   :  { %p3368_p3 = scmp.ne.s32.totalorder %s33_s22, %s3367_s30  ;;  %p3373_p5 = scmp.lt.s32.totalorder %s3367_s30, %s3367_s30 }
   0xd   :  { %p3374_p6 = por %p3373_p5, %p3372_p4 }
   0xf   :  { %p3375_p7 = pnand %p3374_p6, %p3368_p3 }
  0x11   :  { %3378 = shalt.err (!%p3375_p7)
}
  0x12   :  { %s3476_s7 = smov 128   ;;  %s3477_s8 = smov 8  }
  0x13   :  { %38 = dma.hbm_to_vmem [thread:$0]  %s3658_s1, 32768, %s33_s22, [#allocation6], %s3476_s7, %s3476_s7, %s3477_s8  }
  0x14   :  { %s3478_s11 = smov [#allocation2]   ;;  %s3379_s15 = scalar_lea.hbm %s3657_s0, 2048 }
  0x15   :  { %s20_s12 = sshll.u32 %s3478_s11, 4  ;;  %p3380_p8 = scmp.ne.s32.totalorder %s3657_s0, %s3379_s15  ;;  %s21_s12 = int_to_ptr.vmem [resolvable:$true] %s20_s12 }
  0x16   :  { %p3383_p9 = scmp.lt.u32.totalorder %s3379_s15, %s3657_s0 }
  0x18   :  { %p3385_p10 = pnand %p3383_p9, %p3380_p8 }
  0x1a   :  { %3388 = shalt.err (!%p3385_p10)
}
  0x1b   :  { %s3389_s20 = scalar_lea.vmem %s21_s12, 2048  ;;  %p3394_p12 = scmp.lt.s32.totalorder %s21_s12, %s21_s12 }
  0x1c   :  { %p3390_p11 = scmp.ne.s32.totalorder %s21_s12, %s3389_s20  ;;  %p3395_p13 = scmp.lt.s32.totalorder %s3389_s20, %s3389_s20 }
  0x1e   :  { %p3396_p0 = por %p3395_p13, %p3394_p12 }
  0x20   :  { %p3397_p1 = pnand %p3396_p0, %p3390_p11 }
  0x22   :  { %3400 = shalt.err (!%p3397_p1)
}
  0x23   :  { %s3479_s1 = smov 1024   ;;  %s3480_s21 = smov 64  }
  0x24   :  { %26 = dma.hbm_to_vmem [thread:$0]  %s3657_s0, 2048, %s21_s12, [#allocation3], %s3479_s1, %s3479_s1, %s3480_s21  }
  0x25   :  { %s3481_s24 = smov [#allocation7]   ;;  %s3482_s26 = smov [#allocation8]  }
  0x26   :  { %s46_s25 = sshll.u32 %s3481_s24, 4  ;;  %s60_s27 = sshll.u32 %s3482_s26, 4  ;;  %s47_s25 = int_to_ptr.vmem [resolvable:$true] %s46_s25  ;;  %s3548_s27 = int_to_ptr.vmem [resolvable:$true] %s60_s27 }
  0x27   :  { %s3401_s30 = scalar_lea.hbm %s3660_s3, 4096 }
  0x28   :  { %p3402_p2 = scmp.ne.s32.totalorder %s3660_s3, %s3401_s30  ;;  %p3405_p3 = scmp.lt.u32.totalorder %s3401_s30, %s3660_s3 }
  0x2a   :  { %p3407_p4 = pnand %p3405_p3, %p3402_p2 }
  0x2c   :  { %3410 = shalt.err (!%p3407_p4)
}
  0x2d   :  { %s3411_s0 = scalar_lea.vmem %s47_s25, 4096  ;;  %p3416_p6 = scmp.lt.s32.totalorder %s47_s25, %s47_s25 }
  0x2e   :  { %p3412_p5 = scmp.ne.s32.totalorder %s47_s25, %s3411_s0  ;;  %p3417_p7 = scmp.lt.s32.totalorder %s3411_s0, %s3411_s0 }
  0x30   :  { %p3418_p8 = por %p3417_p7, %p3416_p6 }
  0x32   :  { %p3419_p9 = pnand %p3418_p8, %p3412_p5 }
  0x34   :  { %3422 = shalt.err (!%p3419_p9)
}
  0x35   :  { %52 = dma.hbm_to_vmem [thread:$0]  %s3660_s3, 4096, %s47_s25, [#allocation6], %s3476_s7, %s3476_s7, %s3477_s8  }
  0x36   :  { %s3423_s17 = scalar_lea.hbm %s3662_s5, 2048 }
  0x37   :  { %p3424_p10 = scmp.ne.s32.totalorder %s3662_s5, %s3423_s17  ;;  %p3427_p11 = scmp.lt.u32.totalorder %s3423_s17, %s3662_s5 }
  0x39   :  { %p3429_p12 = pnand %p3427_p11, %p3424_p10 }
  0x3b   :  { %3432 = shalt.err (!%p3429_p12)
}
  0x3c   :  { %s3433_s22 = scalar_lea.vmem %s3548_s27, 2048  ;;  %p3438_p0 = scmp.lt.s32.totalorder %s3548_s27, %s3548_s27 }
  0x3d   :  { %p3434_p13 = scmp.ne.s32.totalorder %s3548_s27, %s3433_s22  ;;  %p3439_p1 = scmp.lt.s32.totalorder %s3433_s22, %s3433_s22 }
  0x3f   :  { %p3440_p2 = por %p3439_p1, %p3438_p0 }
  0x41   :  { %p3441_p3 = pnand %p3440_p2, %p3434_p13 }
  0x43   :  { %3444 = shalt.err (!%p3441_p3)
}
  0x44   :  { %s3483_s3 = smov 4  }
  0x45   :  { %66 = dma.hbm_to_vmem [thread:$0]  %s3662_s5, 2048, %s3548_s27, [#allocation9], %s3480_s21, %s3480_s21, %s3483_s3  }
  0x46   :  { %3467 = dma.done.wait [#allocation3], 2048  }
  0x47   :  { %3468 = vsyncadd [#allocation3], 4294965248 }
  0x48   :  { %3469 = dma.done.wait [#allocation6], 36864  }
  0x49   :  { %3470 = vsyncadd [#allocation6], 4294930432 }
  0x4a   :  { %3471 = dma.done.wait [#allocation9], 2048  }
  0x4b   :  { %3472 = vsyncadd [#allocation9], 4294965248  ;;  %v2909_v0 = vld [vmem:[#allocation5 + $0x4] ss:$8 sps:$4 sm:$0xff]   ;;  %v2913_v2 = vld [vmem:[#allocation5] ss:$8 sps:$4 sm:$0xff]  }
  0x4c   :  { %v2911_v1 = vld [vmem:[#allocation5 + $0x304] ss:$8 sps:$4 sm:$0xff]   ;;  %1724 = vmatprep.subr.bf16.mxu1 %v2909_v0  ;;  %v2914_v3 = vld [vmem:[#allocation5 + $0x300] ss:$8 sps:$4 sm:$0xff]   ;;  %v2915_v4 = vld [vmem:[#allocation5 + $0x14] ss:$8 sps:$4 sm:$0xff]  }
  0x4d   :  { %1853 = vmatprep.subr.bf16.mxu0 %v2911_v1  ;;  %1725 = vmatpush1.bf16.msra.mxu1 %v2913_v2  ;;  %v2917_v5 = vld [vmem:[#allocation5 + $0x314] ss:$8 sps:$4 sm:$0xff]   ;;  %v2919_v6 = vld [vmem:[#allocation5 + $0x10] ss:$8 sps:$4 sm:$0xff]   ;;  %v2921_v8 = vld [vmem:[#allocation5 + $0x24] ss:$8 sps:$4 sm:$0xff]  }
  0x4e   :  { %1854 = vmatpush1.bf16.msra.mxu0 %v2914_v3  ;;  %1726 = vmatprep.subr.bf16.mxu1 %v2915_v4  ;;  %v2920_v7 = vld [vmem:[#allocation5 + $0x310] ss:$8 sps:$4 sm:$0xff]   ;;  %v2923_v9 = vld [vmem:[#allocation5 + $0x324] ss:$8 sps:$4 sm:$0xff]   ;;  %v2925_v10 = vld [vmem:[#allocation5 + $0x20] ss:$8 sps:$4 sm:$0xff]  }
  0x4f   :  { %1855 = vmatprep.subr.bf16.mxu0 %v2917_v5  ;;  %v2926_v11 = vld [vmem:[#allocation5 + $0x320] ss:$8 sps:$4 sm:$0xff]   ;;  %v2927_v12 = vld [vmem:[#allocation5 + $0x34] ss:$8 sps:$4 sm:$0xff]   ;;  %v2931_v14 = vld [vmem:[#allocation5 + $0x30] ss:$8 sps:$4 sm:$0xff]  }
  0x50   :  { %v2929_v13 = vld [vmem:[#allocation5 + $0x334] ss:$8 sps:$4 sm:$0xff]   ;;  %v2932_v15 = vld [vmem:[#allocation5 + $0x330] ss:$8 sps:$4 sm:$0xff]   ;;  %v2933_v16 = vld [vmem:[#allocation5 + $0x44] ss:$8 sps:$4 sm:$0xff]  }
  0x51   :  { %1727 = vmatpush1.bf16.msra.mxu1 %v2919_v6  ;;  %v2935_v17 = vld [vmem:[#allocation5 + $0x344] ss:$8 sps:$4 sm:$0xff]   ;;  %v2937_v18 = vld [vmem:[#allocation5 + $0x40] ss:$8 sps:$4 sm:$0xff]   ;;  %v2939_v20 = vld [vmem:[#allocation5 + $0x54] ss:$8 sps:$4 sm:$0xff]  }
  0x52   :  { %1856 = vmatpush1.bf16.msra.mxu0 %v2920_v7  ;;  %1728 = vmatprep.subr.bf16.mxu1 %v2921_v8  ;;  %v2938_v19 = vld [vmem:[#allocation5 + $0x340] ss:$8 sps:$4 sm:$0xff]   ;;  %v2941_v21 = vld [vmem:[#allocation5 + $0x354] ss:$8 sps:$4 sm:$0xff]   ;;  %v2943_v22 = vld [vmem:[#allocation5 + $0x50] ss:$8 sps:$4 sm:$0xff]  }
  0x53   :  { %1857 = vmatprep.subr.bf16.mxu0 %v2923_v9  ;;  %v2944_v23 = vld [vmem:[#allocation5 + $0x350] ss:$8 sps:$4 sm:$0xff]   ;;  %v2945_v24 = vld [vmem:[#allocation5 + $0x64] ss:$8 sps:$4 sm:$0xff]   ;;  %v2949_v26 = vld [vmem:[#allocation5 + $0x60] ss:$8 sps:$4 sm:$0xff]  }
  0x54   :  { %v2947_v25 = vld [vmem:[#allocation5 + $0x364] ss:$8 sps:$4 sm:$0xff]   ;;  %v2950_v27 = vld [vmem:[#allocation5 + $0x360] ss:$8 sps:$4 sm:$0xff]   ;;  %v2951_v28 = vld [vmem:[#allocation5 + $0x74] ss:$8 sps:$4 sm:$0xff]  }
  0x55   :  { %1729 = vmatpush1.bf16.msra.mxu1 %v2925_v10  ;;  %v2953_v29 = vld [vmem:[#allocation5 + $0x374] ss:$8 sps:$4 sm:$0xff]   ;;  %v2955_v30 = vld [vmem:[#allocation5 + $0x70] ss:$8 sps:$4 sm:$0xff]   ;;  %v2957_v32 = vld [vmem:[#allocation5 + $0x84] ss:$8 sps:$4 sm:$0xff]  }
  0x56   :  { %1858 = vmatpush1.bf16.msra.mxu0 %v2926_v11  ;;  %1730 = vmatprep.subr.bf16.mxu1 %v2927_v12  ;;  %v2956_v31 = vld [vmem:[#allocation5 + $0x370] ss:$8 sps:$4 sm:$0xff]   ;;  %v2959_v33 = vld [vmem:[#allocation5 + $0x384] ss:$8 sps:$4 sm:$0xff]   ;;  %v2961_v34 = vld [vmem:[#allocation5 + $0x80] ss:$8 sps:$4 sm:$0xff]  }
  0x57   :  { %1859 = vmatprep.subr.bf16.mxu0 %v2929_v13  ;;  %v2962_v35 = vld [vmem:[#allocation5 + $0x380] ss:$8 sps:$4 sm:$0xff]   ;;  %v2963_v36 = vld [vmem:[#allocation5 + $0x94] ss:$8 sps:$4 sm:$0xff]   ;;  %v2967_v38 = vld [vmem:[#allocation5 + $0x90] ss:$8 sps:$4 sm:$0xff]  }
  0x58   :  { %v2965_v37 = vld [vmem:[#allocation5 + $0x394] ss:$8 sps:$4 sm:$0xff]   ;;  %v2968_v39 = vld [vmem:[#allocation5 + $0x390] ss:$8 sps:$4 sm:$0xff]   ;;  %v2969_v40 = vld [vmem:[#allocation5 + $0xa4] ss:$8 sps:$4 sm:$0xff]  }
  0x59   :  { %1731 = vmatpush1.bf16.msra.mxu1 %v2931_v14  ;;  %v2971_v41 = vld [vmem:[#allocation5 + $0x3a4] ss:$8 sps:$4 sm:$0xff]   ;;  %v2973_v42 = vld [vmem:[#allocation5 + $0xa0] ss:$8 sps:$4 sm:$0xff]   ;;  %v2975_v44 = vld [vmem:[#allocation5 + $0xb4] ss:$8 sps:$4 sm:$0xff]  }
  0x5a   :  { %1860 = vmatpush1.bf16.msra.mxu0 %v2932_v15  ;;  %1732 = vmatprep.subr.bf16.mxu1 %v2933_v16  ;;  %v2974_v43 = vld [vmem:[#allocation5 + $0x3a0] ss:$8 sps:$4 sm:$0xff]   ;;  %v2977_v45 = vld [vmem:[#allocation5 + $0x3b4] ss:$8 sps:$4 sm:$0xff]   ;;  %v2979_v46 = vld [vmem:[#allocation5 + $0xb0] ss:$8 sps:$4 sm:$0xff]  }
  0x5b   :  { %1861 = vmatprep.subr.bf16.mxu0 %v2935_v17  ;;  %v2980_v47 = vld [vmem:[#allocation5 + $0x3b0] ss:$8 sps:$4 sm:$0xff]   ;;  %v80_v48 = vld [vmem:[#allocation2] sm:$0xff]  ;;  %v2987_v58 = vld [vmem:[#allocation5 + $0xd4] ss:$8 sps:$4 sm:$0xff]  }
  0x5c   :  { %v88_v49 = vld [vmem:[#allocation2 + $0x40] sm:$0xff]  ;;  %v83_v53 = vld [vmem:[#allocation2 + $0x18] sm:$0xff] }
  0x5d   :  { %1733 = vmatpush1.bf16.msra.mxu1 %v2937_v18  ;;  %v2981_v50 = vld [vmem:[#allocation5 + $0xc4] ss:$8 sps:$4 sm:$0xff]   ;;  %v2526_v52 = vcombine.high %v80_v48, %v88_v49  ;;  %v91_v54 = vld [vmem:[#allocation2 + $0x58] sm:$0xff]  ;;  %v2985_v56 = vld [vmem:[#allocation5 + $0xc0] ss:$8 sps:$4 sm:$0xff]   ;;  %v2525_v8 = vcombine.low %v80_v48, %v88_v49 }
  0x5e   :  { %1862 = vmatpush1.bf16.msra.mxu0 %v2938_v19  ;;  %1734 = vmatprep.subr.bf16.mxu1 %v2939_v20  ;;  %v2983_v51 = vld [vmem:[#allocation5 + $0x3c4] ss:$8 sps:$4 sm:$0xff]   ;;  %v2532_v55 = vcombine.high %v83_v53, %v91_v54  ;;  %v2986_v57 = vld [vmem:[#allocation5 + $0x3c0] ss:$8 sps:$4 sm:$0xff]   ;;  %v2989_v59 = vld [vmem:[#allocation5 + $0x3d4] ss:$8 sps:$4 sm:$0xff]   ;;  %v2531_v10 = vcombine.low %v83_v53, %v91_v54 }
  0x5f   :  { %1863 = vmatprep.subr.bf16.mxu0 %v2941_v21  ;;  %1756 = vmatprep.mubr.bf16.mxu1 %v2526_v52  ;;  %v2991_v60 = vld [vmem:[#allocation5 + $0xd0] ss:$8 sps:$4 sm:$0xff]   ;;  %v2993_v62 = vld [vmem:[#allocation5 + $0xe4] ss:$8 sps:$4 sm:$0xff]   ;;  %v2997_v0 = vld [vmem:[#allocation5 + $0xe0] ss:$8 sps:$4 sm:$0xff]  }
  0x60   :  { %1885 = vmatprep.mubr.bf16.mxu0 %v2532_v55  ;;  %v2992_v61 = vld [vmem:[#allocation5 + $0x3d0] ss:$8 sps:$4 sm:$0xff]   ;;  %v2995_v63 = vld [vmem:[#allocation5 + $0x3e4] ss:$8 sps:$4 sm:$0xff]   ;;  %v2998_v1 = vld [vmem:[#allocation5 + $0x3e0] ss:$8 sps:$4 sm:$0xff]  }
  0x61   :  { %1735 = vmatpush1.bf16.msra.mxu1 %v2943_v22  ;;  %v2999_v2 = vld [vmem:[#allocation5 + $0xf4] ss:$8 sps:$4 sm:$0xff]   ;;  %v3003_v4 = vld [vmem:[#allocation5 + $0xf0] ss:$8 sps:$4 sm:$0xff]   ;;  %v3007_v6 = vld [vmem:[#allocation5 + $0x104] ss:$8 sps:$4 sm:$0xff]  }
  0x62   :  { %1864 = vmatpush1.bf16.msra.mxu0 %v2944_v23  ;;  %1736 = vmatprep.subr.bf16.mxu1 %v2945_v24  ;;  %v3001_v3 = vld [vmem:[#allocation5 + $0x3f4] ss:$8 sps:$4 sm:$0xff]   ;;  %v3004_v5 = vld [vmem:[#allocation5 + $0x3f0] ss:$8 sps:$4 sm:$0xff]   ;;  %v3010_v7 = vld [vmem:[#allocation5 + $0x404] ss:$8 sps:$4 sm:$0xff]  }
  0x63   :  { %1865 = vmatprep.subr.bf16.mxu0 %v2947_v25  ;;  %v3005_v9 = vld [vmem:[#allocation5 + $0x100] ss:$8 sps:$4 sm:$0xff]   ;;  %v3013_v12 = vld [vmem:[#allocation5 + $0x114] ss:$8 sps:$4 sm:$0xff]   ;;  %v3011_v14 = vld [vmem:[#allocation5 + $0x110] ss:$8 sps:$4 sm:$0xff]  }
  0x64   :  { %v3008_v11 = vld [vmem:[#allocation5 + $0x400] ss:$8 sps:$4 sm:$0xff]   ;;  %v3016_v13 = vld [vmem:[#allocation5 + $0x414] ss:$8 sps:$4 sm:$0xff]   ;;  %v3014_v15 = vld [vmem:[#allocation5 + $0x410] ss:$8 sps:$4 sm:$0xff]  }
  0x65   :  { %1737 = vmatpush1.bf16.msra.mxu1 %v2949_v26  ;;  %v3019_v16 = vld [vmem:[#allocation5 + $0x124] ss:$8 sps:$4 sm:$0xff]   ;;  %v3017_v18 = vld [vmem:[#allocation5 + $0x120] ss:$8 sps:$4 sm:$0xff]   ;;  %v3025_v20 = vld [vmem:[#allocation5 + $0x134] ss:$8 sps:$4 sm:$0xff]  }
  0x66   :  { %1866 = vmatpush1.bf16.msra.mxu0 %v2950_v27  ;;  %1738 = vmatprep.subr.bf16.mxu1 %v2951_v28  ;;  %v3022_v17 = vld [vmem:[#allocation5 + $0x424] ss:$8 sps:$4 sm:$0xff]   ;;  %v3020_v19 = vld [vmem:[#allocation5 + $0x420] ss:$8 sps:$4 sm:$0xff]   ;;  %v3028_v21 = vld [vmem:[#allocation5 + $0x434] ss:$8 sps:$4 sm:$0xff]  }
  0x67   :  { %1867 = vmatprep.subr.bf16.mxu0 %v2953_v29  ;;  %v3023_v22 = vld [vmem:[#allocation5 + $0x130] ss:$8 sps:$4 sm:$0xff]   ;;  %v3031_v24 = vld [vmem:[#allocation5 + $0x144] ss:$8 sps:$4 sm:$0xff]   ;;  %v3029_v26 = vld [vmem:[#allocation5 + $0x140] ss:$8 sps:$4 sm:$0xff]  }
  0x68   :  { %v3026_v23 = vld [vmem:[#allocation5 + $0x430] ss:$8 sps:$4 sm:$0xff]   ;;  %v3034_v25 = vld [vmem:[#allocation5 + $0x444] ss:$8 sps:$4 sm:$0xff]   ;;  %v3032_v27 = vld [vmem:[#allocation5 + $0x440] ss:$8 sps:$4 sm:$0xff]  }
  0x69   :  { %1739 = vmatpush1.bf16.msra.mxu1 %v2955_v30  ;;  %v3037_v28 = vld [vmem:[#allocation5 + $0x154] ss:$8 sps:$4 sm:$0xff]   ;;  %v3035_v30 = vld [vmem:[#allocation5 + $0x150] ss:$8 sps:$4 sm:$0xff]   ;;  %v3053_v48 = vld [vmem:[#allocation5 + $0x180] ss:$8 sps:$4 sm:$0xff]  }
  0x6a   :  { %1868 = vmatpush1.bf16.msra.mxu0 %v2956_v31  ;;  %1740 = vmatprep.subr.bf16.mxu1 %v2957_v32  ;;  %v3040_v29 = vld [vmem:[#allocation5 + $0x454] ss:$8 sps:$4 sm:$0xff]   ;;  %v3038_v31 = vld [vmem:[#allocation5 + $0x450] ss:$8 sps:$4 sm:$0xff]   ;;  %v3043_v32 = vld [vmem:[#allocation5 + $0x164] ss:$8 sps:$4 sm:$0xff]  }
  0x6b   :  { %1869 = vmatprep.subr.bf16.mxu0 %v2959_v33  ;;  %v3046_v33 = vld [vmem:[#allocation5 + $0x464] ss:$8 sps:$4 sm:$0xff]   ;;  %v3056_v49 = vld [vmem:[#allocation5 + $0x480] ss:$8 sps:$4 sm:$0xff]   ;;  %v3059_v52 = vld [vmem:[#allocation5 + $0x190] ss:$8 sps:$4 sm:$0xff]  }
  0x6c   :  { %v3062_v53 = vld [vmem:[#allocation5 + $0x490] ss:$8 sps:$4 sm:$0xff]   ;;  %v3067_v54 = vld [vmem:[#allocation5 + $0x1a4] ss:$8 sps:$4 sm:$0xff]  }
  0x6d   :  { %1741 = vmatpush1.bf16.msra.mxu1 %v2961_v34  ;;  %v3041_v34 = vld [vmem:[#allocation5 + $0x160] ss:$8 sps:$4 sm:$0xff]   ;;  %v3070_v55 = vld [vmem:[#allocation5 + $0x4a4] ss:$8 sps:$4 sm:$0xff]  }
  0x6e   :  { %1870 = vmatpush1.bf16.msra.mxu0 %v2962_v35  ;;  %1742 = vmatprep.subr.bf16.mxu1 %v2963_v36  ;;  %v3044_v35 = vld [vmem:[#allocation5 + $0x460] ss:$8 sps:$4 sm:$0xff]  }
  0x6f   :  { %1871 = vmatprep.subr.bf16.mxu0 %v2965_v37  ;;  %v3584_v36 = vld [vmem:[#allocation2 + $0x8] sm:$0xff] }
  0x70   :  { %v3586_v37 = vld [vmem:[#allocation2 + $0x48] sm:$0xff] }
  0x71   :  { %1743 = vmatpush1.bf16.msra.mxu1 %v2967_v38  ;;  %v3049_v38 = vld [vmem:[#allocation5 + $0x174] ss:$8 sps:$4 sm:$0xff]  }
  0x72   :  { %1872 = vmatpush1.bf16.msra.mxu0 %v2968_v39  ;;  %1744 = vmatprep.subr.bf16.mxu1 %v2969_v40  ;;  %v3052_v39 = vld [vmem:[#allocation5 + $0x474] ss:$8 sps:$4 sm:$0xff]   ;;  %v2528_v40 = vcombine.high %v3584_v36, %v3586_v37 }
  0x73   :  { %1873 = vmatprep.subr.bf16.mxu0 %v2971_v41  ;;  %v3590_v41 = vld [vmem:[#allocation2 + $0x20] sm:$0xff] }
  0x75   :  { %1745 = vmatpush1.bf16.msra.mxu1 %v2973_v42  ;;  %v3592_v42 = vld [vmem:[#allocation2 + $0x60] sm:$0xff] }
  0x76   :  { %1874 = vmatpush1.bf16.msra.mxu0 %v2974_v43  ;;  %1746 = vmatprep.subr.bf16.mxu1 %v2975_v44  ;;  %v2534_v43 = vcombine.high %v3590_v41, %v3592_v42  ;;  %v3047_v44 = vld [vmem:[#allocation5 + $0x170] ss:$8 sps:$4 sm:$0xff]  }
  0x77   :  { %1875 = vmatprep.subr.bf16.mxu0 %v2977_v45  ;;  %v3050_v45 = vld [vmem:[#allocation5 + $0x470] ss:$8 sps:$4 sm:$0xff]  }
  0x79   :  { %1747 = vmatpush1.bf16.msra.mxu1 %v2979_v46  ;;  %v3055_v46 = vld [vmem:[#allocation5 + $0x184] ss:$8 sps:$4 sm:$0xff]  }
  0x7a   :  { %1876 = vmatpush1.bf16.msra.mxu0 %v2980_v47  ;;  %1748 = vmatprep.subr.bf16.mxu1 %v2981_v50  ;;  %v3058_v47 = vld [vmem:[#allocation5 + $0x484] ss:$8 sps:$4 sm:$0xff]   ;;  %v3061_v50 = vld [vmem:[#allocation5 + $0x194] ss:$8 sps:$4 sm:$0xff]  }
  0x7b   :  { %1877 = vmatprep.subr.bf16.mxu0 %v2983_v51  ;;  %v3064_v51 = vld [vmem:[#allocation5 + $0x494] ss:$8 sps:$4 sm:$0xff]  }
  0x7d   :  { %1749 = vmatpush1.bf16.msra.mxu1 %v2985_v56  ;;  %v3065_v56 = vld [vmem:[#allocation5 + $0x1a0] ss:$8 sps:$4 sm:$0xff]  }
  0x7e   :  { %1878 = vmatpush1.bf16.msra.mxu0 %v2986_v57  ;;  %1750 = vmatprep.subr.bf16.mxu1 %v2987_v58  ;;  %v3068_v57 = vld [vmem:[#allocation5 + $0x4a0] ss:$8 sps:$4 sm:$0xff]   ;;  %v3073_v58 = vld [vmem:[#allocation5 + $0x1b4] ss:$8 sps:$4 sm:$0xff]  }
  0x7f   :  { %1879 = vmatprep.subr.bf16.mxu0 %v2989_v59  ;;  %v3076_v59 = vld [vmem:[#allocation5 + $0x4b4] ss:$8 sps:$4 sm:$0xff]  }
  0x81   :  { %1751 = vmatpush1.bf16.msra.mxu1 %v2991_v60  ;;  %v3071_v60 = vld [vmem:[#allocation5 + $0x1b0] ss:$8 sps:$4 sm:$0xff]  }
  0x82   :  { %1880 = vmatpush1.bf16.msra.mxu0 %v2992_v61  ;;  %1752 = vmatprep.subr.bf16.mxu1 %v2993_v62  ;;  %v3074_v61 = vld [vmem:[#allocation5 + $0x4b0] ss:$8 sps:$4 sm:$0xff]   ;;  %v3079_v62 = vld [vmem:[#allocation5 + $0x1c4] ss:$8 sps:$4 sm:$0xff]  }
  0x83   :  { %1881 = vmatprep.subr.bf16.mxu0 %v2995_v63  ;;  %v3082_v63 = vld [vmem:[#allocation5 + $0x4c4] ss:$8 sps:$4 sm:$0xff]  }
  0x85   :  { %1753 = vmatpush1.bf16.msra.mxu1 %v2997_v0  ;;  %v3077_v0 = vld [vmem:[#allocation5 + $0x1c0] ss:$8 sps:$4 sm:$0xff]  }
  0x86   :  { %1882 = vmatpush1.bf16.msra.mxu0 %v2998_v1  ;;  %1754 = vmatprep.subr.bf16.mxu1 %v2999_v2  ;;  %v3080_v1 = vld [vmem:[#allocation5 + $0x4c0] ss:$8 sps:$4 sm:$0xff]   ;;  %v3085_v2 = vld [vmem:[#allocation5 + $0x1d4] ss:$8 sps:$4 sm:$0xff]  }
  0x87   :  { %1883 = vmatprep.subr.bf16.mxu0 %v3001_v3  ;;  %v3088_v3 = vld [vmem:[#allocation5 + $0x4d4] ss:$8 sps:$4 sm:$0xff]  }
  0x89   :  { %1755 = vmatpush1.bf16.msra.mxu1 %v3003_v4  ;;  %v3083_v4 = vld [vmem:[#allocation5 + $0x1d0] ss:$8 sps:$4 sm:$0xff]  }
  0x8a   :  { %1884 = vmatpush1.bf16.msra.mxu0 %v3004_v5  ;;  %1767 = vmatprep.subr.bf16.mxu1 %v3007_v6  ;;  %v3086_v5 = vld [vmem:[#allocation5 + $0x4d0] ss:$8 sps:$4 sm:$0xff]   ;;  %v3091_v6 = vld [vmem:[#allocation5 + $0x1e4] ss:$8 sps:$4 sm:$0xff]  }
  0x8b   :  { %1896 = vmatprep.subr.bf16.mxu0 %v3010_v7  ;;  %v3094_v7 = vld [vmem:[#allocation5 + $0x4e4] ss:$8 sps:$4 sm:$0xff]  }
  0x8c   :  { %1757 = vmatmul.mubr.bf16.vlgmr.msra.gmra.mrb[0].mxu1 %v2525_v8  ;;  %v3089_v8 = vld [vmem:[#allocation5 + $0x1e0] ss:$8 sps:$4 sm:$0xff]  }
  0x8d   :  { %1886 = vmatmul.mubr.bf16.vlgmr.msra.gmra.mrb[0].mxu0 %v2531_v10  ;;  %1768 = vmatpush1.bf16.msra.mxu1 %v3005_v9  ;;  %v3092_v9 = vld [vmem:[#allocation5 + $0x4e0] ss:$8 sps:$4 sm:$0xff]   ;;  %v3097_v10 = vld [vmem:[#allocation5 + $0x1f4] ss:$8 sps:$4 sm:$0xff]  }
  0x8e   :  { %1897 = vmatpush1.bf16.msra.mxu0 %v3008_v11  ;;  %1769 = vmatprep.subr.bf16.mxu1 %v3013_v12  ;;  %v3100_v11 = vld [vmem:[#allocation5 + $0x4f4] ss:$8 sps:$4 sm:$0xff]   ;;  %v3095_v12 = vld [vmem:[#allocation5 + $0x1f0] ss:$8 sps:$4 sm:$0xff]  }
  0x8f   :  { %1898 = vmatprep.subr.bf16.mxu0 %v3016_v13  ;;  %1799 = vmatprep.mubr.bf16.mxu1 %v2528_v40  ;;  %v3098_v13 = vld [vmem:[#allocation5 + $0x4f0] ss:$8 sps:$4 sm:$0xff]   ;;  %v3125_v40 = vld [vmem:[#allocation5 + $0x240] ss:$8 sps:$4 sm:$0xff]  }
  0x90   :  { %1928 = vmatprep.mubr.bf16.mxu0 %v2534_v43  ;;  %v3136_v43 = vld [vmem:[#allocation5 + $0x554] ss:$8 sps:$4 sm:$0xff]  }
  0x91   :  { %1770 = vmatpush1.bf16.msra.mxu1 %v3011_v14  ;;  %v3103_v14 = vld [vmem:[#allocation5 + $0x204] ss:$8 sps:$4 sm:$0xff]  }
  0x92   :  { %1899 = vmatpush1.bf16.msra.mxu0 %v3014_v15  ;;  %1771 = vmatprep.subr.bf16.mxu1 %v3019_v16  ;;  %v3106_v15 = vld [vmem:[#allocation5 + $0x504] ss:$8 sps:$4 sm:$0xff]   ;;  %v2527_v16 = vcombine.low %v3584_v36, %v3586_v37  ;;  %v3119_v36 = vld [vmem:[#allocation5 + $0x230] ss:$8 sps:$4 sm:$0xff]  }
  0x93   :  { %1900 = vmatprep.subr.bf16.mxu0 %v3022_v17  ;;  %v3101_v17 = vld [vmem:[#allocation5 + $0x200] ss:$8 sps:$4 sm:$0xff]   ;;  %v3122_v37 = vld [vmem:[#allocation5 + $0x530] ss:$8 sps:$4 sm:$0xff]  }
  0x95   :  { %1772 = vmatpush1.bf16.msra.mxu1 %v3017_v18  ;;  %v2533_v18 = vcombine.low %v3590_v41, %v3592_v42  ;;  %v3128_v41 = vld [vmem:[#allocation5 + $0x540] ss:$8 sps:$4 sm:$0xff]   ;;  %v3133_v42 = vld [vmem:[#allocation5 + $0x254] ss:$8 sps:$4 sm:$0xff]  }
  0x96   :  { %1901 = vmatpush1.bf16.msra.mxu0 %v3020_v19  ;;  %1773 = vmatprep.subr.bf16.mxu1 %v3025_v20  ;;  %v3104_v19 = vld [vmem:[#allocation5 + $0x500] ss:$8 sps:$4 sm:$0xff]   ;;  %v3109_v20 = vld [vmem:[#allocation5 + $0x214] ss:$8 sps:$4 sm:$0xff]  }
  0x97   :  { %1902 = vmatprep.subr.bf16.mxu0 %v3028_v21  ;;  %v3112_v21 = vld [vmem:[#allocation5 + $0x514] ss:$8 sps:$4 sm:$0xff]  }
  0x99   :  { %1774 = vmatpush1.bf16.msra.mxu1 %v3023_v22  ;;  %v3107_v22 = vld [vmem:[#allocation5 + $0x210] ss:$8 sps:$4 sm:$0xff]  }
  0x9a   :  { %1903 = vmatpush1.bf16.msra.mxu0 %v3026_v23  ;;  %1775 = vmatprep.subr.bf16.mxu1 %v3031_v24  ;;  %v3110_v23 = vld [vmem:[#allocation5 + $0x510] ss:$8 sps:$4 sm:$0xff]  }
  0x9b   :  { %1904 = vmatprep.subr.bf16.mxu0 %v3034_v25  ;;  %v3600_v24 = vld [vmem:[#allocation2 + $0x10] sm:$0xff] }
  0x9c   :  { %v3602_v25 = vld [vmem:[#allocation2 + $0x50] sm:$0xff] }
  0x9d   :  { %1776 = vmatpush1.bf16.msra.mxu1 %v3029_v26  ;;  %v3604_v26 = vld [vmem:[#allocation2 + $0x28] sm:$0xff] }
  0x9e   :  { %1905 = vmatpush1.bf16.msra.mxu0 %v3032_v27  ;;  %1777 = vmatprep.subr.bf16.mxu1 %v3037_v28  ;;  %v3606_v27 = vld [vmem:[#allocation2 + $0x68] sm:$0xff] }
  0x9f   :  { %1906 = vmatprep.subr.bf16.mxu0 %v3040_v29  ;;  %v3115_v28 = vld [vmem:[#allocation5 + $0x224] ss:$8 sps:$4 sm:$0xff]   ;;  %v2530_v29 = vcombine.high %v3600_v24, %v3602_v25 }
  0xa1   :  { %1778 = vmatpush1.bf16.msra.mxu1 %v3035_v30  ;;  %v3118_v30 = vld [vmem:[#allocation5 + $0x524] ss:$8 sps:$4 sm:$0xff]  }
  0xa2   :  { %1907 = vmatpush1.bf16.msra.mxu0 %v3038_v31  ;;  %1779 = vmatprep.subr.bf16.mxu1 %v3043_v32  ;;  %v2536_v31 = vcombine.high %v3604_v26, %v3606_v27  ;;  %v3113_v32 = vld [vmem:[#allocation5 + $0x220] ss:$8 sps:$4 sm:$0xff]  }
  0xa3   :  { %1908 = vmatprep.subr.bf16.mxu0 %v3046_v33  ;;  %v3116_v33 = vld [vmem:[#allocation5 + $0x520] ss:$8 sps:$4 sm:$0xff]  }
  0xa5   :  { %1780 = vmatpush1.bf16.msra.mxu1 %v3041_v34  ;;  %v3121_v34 = vld [vmem:[#allocation5 + $0x234] ss:$8 sps:$4 sm:$0xff]  }
  0xa6   :  { %1909 = vmatpush1.bf16.msra.mxu0 %v3044_v35  ;;  %1781 = vmatprep.subr.bf16.mxu1 %v3049_v38  ;;  %v3124_v35 = vld [vmem:[#allocation5 + $0x534] ss:$8 sps:$4 sm:$0xff]   ;;  %v3127_v38 = vld [vmem:[#allocation5 + $0x244] ss:$8 sps:$4 sm:$0xff]  }
  0xa7   :  { %1910 = vmatprep.subr.bf16.mxu0 %v3052_v39  ;;  %v3130_v39 = vld [vmem:[#allocation5 + $0x544] ss:$8 sps:$4 sm:$0xff]  }
  0xa9   :  { %1782 = vmatpush1.bf16.msra.mxu1 %v3047_v44  ;;  %v3131_v44 = vld [vmem:[#allocation5 + $0x250] ss:$8 sps:$4 sm:$0xff]  }
  0xaa   :  { %1911 = vmatpush1.bf16.msra.mxu0 %v3050_v45  ;;  %1783 = vmatprep.subr.bf16.mxu1 %v3055_v46  ;;  %v3134_v45 = vld [vmem:[#allocation5 + $0x550] ss:$8 sps:$4 sm:$0xff]   ;;  %v3139_v46 = vld [vmem:[#allocation5 + $0x264] ss:$8 sps:$4 sm:$0xff]  }
  0xab   :  { %1912 = vmatprep.subr.bf16.mxu0 %v3058_v47  ;;  %v3142_v47 = vld [vmem:[#allocation5 + $0x564] ss:$8 sps:$4 sm:$0xff]  }
  0xad   :  { %1784 = vmatpush1.bf16.msra.mxu1 %v3053_v48  ;;  %v3137_v48 = vld [vmem:[#allocation5 + $0x260] ss:$8 sps:$4 sm:$0xff]  }
  0xae   :  { %1913 = vmatpush1.bf16.msra.mxu0 %v3056_v49  ;;  %1785 = vmatprep.subr.bf16.mxu1 %v3061_v50  ;;  %v3140_v49 = vld [vmem:[#allocation5 + $0x560] ss:$8 sps:$4 sm:$0xff]   ;;  %v3145_v50 = vld [vmem:[#allocation5 + $0x274] ss:$8 sps:$4 sm:$0xff]  }
  0xaf   :  { %1914 = vmatprep.subr.bf16.mxu0 %v3064_v51  ;;  %v3148_v51 = vld [vmem:[#allocation5 + $0x574] ss:$8 sps:$4 sm:$0xff]  }
  0xb1   :  { %1786 = vmatpush1.bf16.msra.mxu1 %v3059_v52  ;;  %v3143_v52 = vld [vmem:[#allocation5 + $0x270] ss:$8 sps:$4 sm:$0xff]  }
  0xb2   :  { %1915 = vmatpush1.bf16.msra.mxu0 %v3062_v53  ;;  %1787 = vmatprep.subr.bf16.mxu1 %v3067_v54  ;;  %v3146_v53 = vld [vmem:[#allocation5 + $0x570] ss:$8 sps:$4 sm:$0xff]   ;;  %v3151_v54 = vld [vmem:[#allocation5 + $0x284] ss:$8 sps:$4 sm:$0xff]  }
  0xb3   :  { %1916 = vmatprep.subr.bf16.mxu0 %v3070_v55  ;;  %v3154_v55 = vld [vmem:[#allocation5 + $0x584] ss:$8 sps:$4 sm:$0xff]  }
  0xb5   :  { %1788 = vmatpush1.bf16.msra.mxu1 %v3065_v56  ;;  %v3149_v56 = vld [vmem:[#allocation5 + $0x280] ss:$8 sps:$4 sm:$0xff]  }
  0xb6   :  { %1917 = vmatpush1.bf16.msra.mxu0 %v3068_v57  ;;  %1789 = vmatprep.subr.bf16.mxu1 %v3073_v58  ;;  %v3152_v57 = vld [vmem:[#allocation5 + $0x580] ss:$8 sps:$4 sm:$0xff]   ;;  %v3157_v58 = vld [vmem:[#allocation5 + $0x294] ss:$8 sps:$4 sm:$0xff]  }
  0xb7   :  { %1918 = vmatprep.subr.bf16.mxu0 %v3076_v59  ;;  %v3160_v59 = vld [vmem:[#allocation5 + $0x594] ss:$8 sps:$4 sm:$0xff]  }
  0xb9   :  { %1790 = vmatpush1.bf16.msra.mxu1 %v3071_v60  ;;  %v3155_v60 = vld [vmem:[#allocation5 + $0x290] ss:$8 sps:$4 sm:$0xff]  }
  0xba   :  { %1919 = vmatpush1.bf16.msra.mxu0 %v3074_v61  ;;  %1791 = vmatprep.subr.bf16.mxu1 %v3079_v62  ;;  %v3158_v61 = vld [vmem:[#allocation5 + $0x590] ss:$8 sps:$4 sm:$0xff]   ;;  %v3163_v62 = vld [vmem:[#allocation5 + $0x2a4] ss:$8 sps:$4 sm:$0xff]  }
  0xbb   :  { %1920 = vmatprep.subr.bf16.mxu0 %v3082_v63  ;;  %v3166_v63 = vld [vmem:[#allocation5 + $0x5a4] ss:$8 sps:$4 sm:$0xff]  }
  0xbd   :  { %1792 = vmatpush1.bf16.msra.mxu1 %v3077_v0  ;;  %v3161_v0 = vld [vmem:[#allocation5 + $0x2a0] ss:$8 sps:$4 sm:$0xff]  }
  0xbe   :  { %1921 = vmatpush1.bf16.msra.mxu0 %v3080_v1  ;;  %1793 = vmatprep.subr.bf16.mxu1 %v3085_v2  ;;  %v3164_v1 = vld [vmem:[#allocation5 + $0x5a0] ss:$8 sps:$4 sm:$0xff]   ;;  %v3169_v2 = vld [vmem:[#allocation5 + $0x2b4] ss:$8 sps:$4 sm:$0xff]  }
  0xbf   :  { %1922 = vmatprep.subr.bf16.mxu0 %v3088_v3  ;;  %v3172_v3 = vld [vmem:[#allocation5 + $0x5b4] ss:$8 sps:$4 sm:$0xff]  }
  0xc1   :  { %1794 = vmatpush1.bf16.msra.mxu1 %v3083_v4  ;;  %v3167_v4 = vld [vmem:[#allocation5 + $0x2b0] ss:$8 sps:$4 sm:$0xff]  }
  0xc2   :  { %1923 = vmatpush1.bf16.msra.mxu0 %v3086_v5  ;;  %1795 = vmatprep.subr.bf16.mxu1 %v3091_v6  ;;  %v3170_v5 = vld [vmem:[#allocation5 + $0x5b0] ss:$8 sps:$4 sm:$0xff]   ;;  %v3175_v6 = vld [vmem:[#allocation5 + $0x2c4] ss:$8 sps:$4 sm:$0xff]  }
  0xc3   :  { %1924 = vmatprep.subr.bf16.mxu0 %v3094_v7  ;;  %v3178_v7 = vld [vmem:[#allocation5 + $0x5c4] ss:$8 sps:$4 sm:$0xff]  }
  0xc5   :  { %1796 = vmatpush1.bf16.msra.mxu1 %v3089_v8  ;;  %v3173_v8 = vld [vmem:[#allocation5 + $0x2c0] ss:$8 sps:$4 sm:$0xff]  }
  0xc6   :  { %1925 = vmatpush1.bf16.msra.mxu0 %v3092_v9  ;;  %1797 = vmatprep.subr.bf16.mxu1 %v3097_v10  ;;  %v3176_v9 = vld [vmem:[#allocation5 + $0x5c0] ss:$8 sps:$4 sm:$0xff]   ;;  %v3181_v10 = vld [vmem:[#allocation5 + $0x2d4] ss:$8 sps:$4 sm:$0xff]  }
  0xc7   :  { %1926 = vmatprep.subr.bf16.mxu0 %v3100_v11  ;;  %v3184_v11 = vld [vmem:[#allocation5 + $0x5d4] ss:$8 sps:$4 sm:$0xff]  }
  0xc9   :  { %1798 = vmatpush1.bf16.msra.mxu1 %v3095_v12  ;;  %v3179_v12 = vld [vmem:[#allocation5 + $0x2d0] ss:$8 sps:$4 sm:$0xff]  }
  0xca   :  { %1927 = vmatpush1.bf16.msra.mxu0 %v3098_v13  ;;  %1810 = vmatprep.subr.bf16.mxu1 %v3103_v14  ;;  %v3182_v13 = vld [vmem:[#allocation5 + $0x5d0] ss:$8 sps:$4 sm:$0xff]   ;;  %v3187_v14 = vld [vmem:[#allocation5 + $0x2e4] ss:$8 sps:$4 sm:$0xff]  }
  0xcb   :  { %1939 = vmatprep.subr.bf16.mxu0 %v3106_v15  ;;  %v3190_v15 = vld [vmem:[#allocation5 + $0x5e4] ss:$8 sps:$4 sm:$0xff]  }
  0xcc   :  { %1800 = vmatmul.mubr.bf16.vlgmr.msra.gmra.mrb[0].mxu1 %v2527_v16  ;;  %v3185_v16 = vld [vmem:[#allocation5 + $0x2e0] ss:$8 sps:$4 sm:$0xff]  }
  0xcd   :  { %1929 = vmatmul.mubr.bf16.vlgmr.msra.gmra.mrb[0].mxu0 %v2533_v18  ;;  %1811 = vmatpush1.bf16.msra.mxu1 %v3101_v17  ;;  %v3188_v17 = vld [vmem:[#allocation5 + $0x5e0] ss:$8 sps:$4 sm:$0xff]   ;;  %v3193_v18 = vld [vmem:[#allocation5 + $0x2f4] ss:$8 sps:$4 sm:$0xff]  }
  0xce   :  { %1940 = vmatpush1.bf16.msra.mxu0 %v3104_v19  ;;  %1812 = vmatprep.subr.bf16.mxu1 %v3109_v20  ;;  %v3196_v19 = vld [vmem:[#allocation5 + $0x5f4] ss:$8 sps:$4 sm:$0xff]   ;;  %v3191_v20 = vld [vmem:[#allocation5 + $0x2f0] ss:$8 sps:$4 sm:$0xff]  }
  0xcf   :  { %1941 = vmatprep.subr.bf16.mxu0 %v3112_v21  ;;  %1842 = vmatprep.mubr.bf16.mxu1 %v2530_v29  ;;  %v3194_v21 = vld [vmem:[#allocation5 + $0x5f0] ss:$8 sps:$4 sm:$0xff]   ;;  %v2529_v29 = vcombine.low %v3600_v24, %v3602_v25  ;;  %v3203_v24 = vld [vmem:[#allocation5 + $0x620] ss:$8 sps:$4 sm:$0xff]   ;;  %v3208_v25 = vld [vmem:[#allocation5 + $0x634] ss:$8 sps:$4 sm:$0xff]  }
  0xd0   :  { %1971 = vmatprep.mubr.bf16.mxu0 %v2536_v31  ;;  %v3197_v31 = vld [vmem:[#allocation5 + $0x600] ss:$8 sps:$4 sm:$0xff]  }
  0xd1   :  { %1813 = vmatpush1.bf16.msra.mxu1 %v3107_v22  ;;  %v3199_v22 = vld [vmem:[#allocation5 + $0x604] ss:$8 sps:$4 sm:$0xff]  }
  0xd2   :  { %1942 = vmatpush1.bf16.msra.mxu0 %v3110_v23  ;;  %1814 = vmatprep.subr.bf16.mxu1 %v3115_v28  ;;  %v3612_v23 = vld [vmem:[#allocation2 + $0x30] sm:$0xff] }
  0xd3   :  { %1943 = vmatprep.subr.bf16.mxu0 %v3118_v30  ;;  %v3614_v28 = vld [vmem:[#allocation2 + $0x70] sm:$0xff]  ;;  %v2535_v30 = vcombine.low %v3604_v26, %v3606_v27  ;;  %v3211_v27 = vld [vmem:[#allocation5 + $0x644] ss:$8 sps:$4 sm:$0xff]  }
  0xd4   :  { %v3206_v26 = vld [vmem:[#allocation5 + $0x630] ss:$8 sps:$4 sm:$0xff]  }
  0xd5   :  { %1815 = vmatpush1.bf16.msra.mxu1 %v3113_v32  ;;  %v3202_v32 = vld [vmem:[#allocation5 + $0x614] ss:$8 sps:$4 sm:$0xff]  }
  0xd6   :  { %1944 = vmatpush1.bf16.msra.mxu0 %v3116_v33  ;;  %1816 = vmatprep.subr.bf16.mxu1 %v3121_v34  ;;  %v2538_v33 = vcombine.high %v3612_v23, %v3614_v28  ;;  %v3200_v34 = vld [vmem:[#allocation5 + $0x610] ss:$8 sps:$4 sm:$0xff]  }
  0xd7   :  { %1945 = vmatprep.subr.bf16.mxu0 %v3124_v35  ;;  %v3205_v35 = vld [vmem:[#allocation5 + $0x624] ss:$8 sps:$4 sm:$0xff]  }
  0xd9   :  { %1817 = vmatpush1.bf16.msra.mxu1 %v3119_v36  ;;  %v3209_v36 = vld [vmem:[#allocation5 + $0x640] ss:$8 sps:$4 sm:$0xff]  }
  0xda   :  { %1946 = vmatpush1.bf16.msra.mxu0 %v3122_v37  ;;  %1818 = vmatprep.subr.bf16.mxu1 %v3127_v38  ;;  %v3214_v37 = vld [vmem:[#allocation5 + $0x654] ss:$8 sps:$4 sm:$0xff]   ;;  %v3212_v38 = vld [vmem:[#allocation5 + $0x650] ss:$8 sps:$4 sm:$0xff]  }
  0xdb   :  { %1947 = vmatprep.subr.bf16.mxu0 %v3130_v39  ;;  %v3217_v39 = vld [vmem:[#allocation5 + $0x664] ss:$8 sps:$4 sm:$0xff]  }
  0xdd   :  { %1819 = vmatpush1.bf16.msra.mxu1 %v3125_v40  ;;  %v3215_v40 = vld [vmem:[#allocation5 + $0x660] ss:$8 sps:$4 sm:$0xff]  }
  0xde   :  { %1948 = vmatpush1.bf16.msra.mxu0 %v3128_v41  ;;  %1820 = vmatprep.subr.bf16.mxu1 %v3133_v42  ;;  %v3220_v41 = vld [vmem:[#allocation5 + $0x674] ss:$8 sps:$4 sm:$0xff]   ;;  %v3218_v42 = vld [vmem:[#allocation5 + $0x670] ss:$8 sps:$4 sm:$0xff]  }
  0xdf   :  { %1949 = vmatprep.subr.bf16.mxu0 %v3136_v43  ;;  %v3223_v43 = vld [vmem:[#allocation5 + $0x684] ss:$8 sps:$4 sm:$0xff]  }
  0xe1   :  { %1821 = vmatpush1.bf16.msra.mxu1 %v3131_v44  ;;  %v3221_v44 = vld [vmem:[#allocation5 + $0x680] ss:$8 sps:$4 sm:$0xff]  }
  0xe2   :  { %1950 = vmatpush1.bf16.msra.mxu0 %v3134_v45  ;;  %1822 = vmatprep.subr.bf16.mxu1 %v3139_v46  ;;  %v3226_v45 = vld [vmem:[#allocation5 + $0x694] ss:$8 sps:$4 sm:$0xff]   ;;  %v3224_v46 = vld [vmem:[#allocation5 + $0x690] ss:$8 sps:$4 sm:$0xff]  }
  0xe3   :  { %1951 = vmatprep.subr.bf16.mxu0 %v3142_v47  ;;  %v3229_v47 = vld [vmem:[#allocation5 + $0x6a4] ss:$8 sps:$4 sm:$0xff]  }
  0xe5   :  { %1823 = vmatpush1.bf16.msra.mxu1 %v3137_v48  ;;  %v3227_v48 = vld [vmem:[#allocation5 + $0x6a0] ss:$8 sps:$4 sm:$0xff]  }
  0xe6   :  { %1952 = vmatpush1.bf16.msra.mxu0 %v3140_v49  ;;  %1824 = vmatprep.subr.bf16.mxu1 %v3145_v50  ;;  %v3232_v49 = vld [vmem:[#allocation5 + $0x6b4] ss:$8 sps:$4 sm:$0xff]   ;;  %v3230_v50 = vld [vmem:[#allocation5 + $0x6b0] ss:$8 sps:$4 sm:$0xff]  }
  0xe7   :  { %1953 = vmatprep.subr.bf16.mxu0 %v3148_v51  ;;  %v3235_v51 = vld [vmem:[#allocation5 + $0x6c4] ss:$8 sps:$4 sm:$0xff]  }
  0xe9   :  { %1825 = vmatpush1.bf16.msra.mxu1 %v3143_v52  ;;  %v3233_v52 = vld [vmem:[#allocation5 + $0x6c0] ss:$8 sps:$4 sm:$0xff]  }
  0xea   :  { %1954 = vmatpush1.bf16.msra.mxu0 %v3146_v53  ;;  %1826 = vmatprep.subr.bf16.mxu1 %v3151_v54  ;;  %v3238_v53 = vld [vmem:[#allocation5 + $0x6d4] ss:$8 sps:$4 sm:$0xff]   ;;  %v3236_v54 = vld [vmem:[#allocation5 + $0x6d0] ss:$8 sps:$4 sm:$0xff]  }
  0xeb   :  { %1955 = vmatprep.subr.bf16.mxu0 %v3154_v55  ;;  %v3241_v55 = vld [vmem:[#allocation5 + $0x6e4] ss:$8 sps:$4 sm:$0xff]  }
  0xed   :  { %1827 = vmatpush1.bf16.msra.mxu1 %v3149_v56  ;;  %v3239_v56 = vld [vmem:[#allocation5 + $0x6e0] ss:$8 sps:$4 sm:$0xff]  }
  0xee   :  { %1956 = vmatpush1.bf16.msra.mxu0 %v3152_v57  ;;  %1828 = vmatprep.subr.bf16.mxu1 %v3157_v58  ;;  %v3244_v57 = vld [vmem:[#allocation5 + $0x6f4] ss:$8 sps:$4 sm:$0xff]   ;;  %v3242_v58 = vld [vmem:[#allocation5 + $0x6f0] ss:$8 sps:$4 sm:$0xff]  }
  0xef   :  { %1957 = vmatprep.subr.bf16.mxu0 %v3160_v59  ;;  %v3247_v59 = vld [vmem:[#allocation5 + $0x704] ss:$8 sps:$4 sm:$0xff]  }
  0xf1   :  { %1829 = vmatpush1.bf16.msra.mxu1 %v3155_v60  ;;  %v3622_v60 = vld [vmem:[#allocation2 + $0x38] sm:$0xff] }
  0xf2   :  { %1958 = vmatpush1.bf16.msra.mxu0 %v3158_v61  ;;  %1830 = vmatprep.subr.bf16.mxu1 %v3163_v62  ;;  %v3624_v61 = vld [vmem:[#allocation2 + $0x78] sm:$0xff]  ;;  %v2537_v62 = vcombine.low %v3612_v23, %v3614_v28  ;;  %v3299_v23 = vld [vmem:[#allocation7 + $0x20] ss:$8 sps:$4 sm:$0xff]  }
  0xf3   :  { %1959 = vmatprep.subr.bf16.mxu0 %v3166_v63  ;;  %v3245_v63 = vld [vmem:[#allocation5 + $0x700] ss:$8 sps:$4 sm:$0xff]   ;;  %v3304_v28 = vld [vmem:[#allocation7 + $0x34] ss:$8 sps:$4 sm:$0xff]  }
  0xf5   :  { %1831 = vmatpush1.bf16.msra.mxu1 %v3161_v0  ;;  %v2540_v0 = vcombine.high %v3622_v60, %v3624_v61 }
  0xf6   :  { %1960 = vmatpush1.bf16.msra.mxu0 %v3164_v1  ;;  %1832 = vmatprep.subr.bf16.mxu1 %v3169_v2  ;;  %v3250_v1 = vld [vmem:[#allocation5 + $0x714] ss:$8 sps:$4 sm:$0xff]   ;;  %v3248_v2 = vld [vmem:[#allocation5 + $0x710] ss:$8 sps:$4 sm:$0xff]  }
  0xf7   :  { %1961 = vmatprep.subr.bf16.mxu0 %v3172_v3  ;;  %v3253_v3 = vld [vmem:[#allocation5 + $0x724] ss:$8 sps:$4 sm:$0xff]  }
  0xf9   :  { %1833 = vmatpush1.bf16.msra.mxu1 %v3167_v4  ;;  %v3251_v4 = vld [vmem:[#allocation5 + $0x720] ss:$8 sps:$4 sm:$0xff]  }
  0xfa   :  { %1962 = vmatpush1.bf16.msra.mxu0 %v3170_v5  ;;  %1834 = vmatprep.subr.bf16.mxu1 %v3175_v6  ;;  %v3256_v5 = vld [vmem:[#allocation5 + $0x734] ss:$8 sps:$4 sm:$0xff]   ;;  %v3254_v6 = vld [vmem:[#allocation5 + $0x730] ss:$8 sps:$4 sm:$0xff]  }
  0xfb   :  { %1963 = vmatprep.subr.bf16.mxu0 %v3178_v7  ;;  %v3259_v7 = vld [vmem:[#allocation5 + $0x744] ss:$8 sps:$4 sm:$0xff]  }
  0xfd   :  { %1835 = vmatpush1.bf16.msra.mxu1 %v3173_v8  ;;  %v3257_v8 = vld [vmem:[#allocation5 + $0x740] ss:$8 sps:$4 sm:$0xff]  }
  0xfe   :  { %1964 = vmatpush1.bf16.msra.mxu0 %v3176_v9  ;;  %1836 = vmatprep.subr.bf16.mxu1 %v3181_v10  ;;  %v3262_v9 = vld [vmem:[#allocation5 + $0x754] ss:$8 sps:$4 sm:$0xff]   ;;  %v3260_v10 = vld [vmem:[#allocation5 + $0x750] ss:$8 sps:$4 sm:$0xff]  }
  0xff   :  { %1965 = vmatprep.subr.bf16.mxu0 %v3184_v11  ;;  %v3265_v11 = vld [vmem:[#allocation5 + $0x764] ss:$8 sps:$4 sm:$0xff]  }
 0x101   :  { %1837 = vmatpush1.bf16.msra.mxu1 %v3179_v12  ;;  %v3263_v12 = vld [vmem:[#allocation5 + $0x760] ss:$8 sps:$4 sm:$0xff]  }
 0x102   :  { %1966 = vmatpush1.bf16.msra.mxu0 %v3182_v13  ;;  %1838 = vmatprep.subr.bf16.mxu1 %v3187_v14  ;;  %v3268_v13 = vld [vmem:[#allocation5 + $0x774] ss:$8 sps:$4 sm:$0xff]   ;;  %v3293_v14 = vld [vmem:[#allocation7] ss:$8 sps:$4 sm:$0xff]  }
 0x103   :  { %1967 = vmatprep.subr.bf16.mxu0 %v3190_v15  ;;  %v3295_v15 = vld [vmem:[#allocation7 + $0x4] ss:$8 sps:$4 sm:$0xff]  }
 0x105   :  { %1839 = vmatpush1.bf16.msra.mxu1 %v3185_v16  ;;  %v3298_v16 = vld [vmem:[#allocation7 + $0x14] ss:$8 sps:$4 sm:$0xff]  }
 0x106   :  { %1968 = vmatpush1.bf16.msra.mxu0 %v3188_v17  ;;  %1840 = vmatprep.subr.bf16.mxu1 %v3193_v18  ;;  %v3266_v17 = vld [vmem:[#allocation5 + $0x770] ss:$8 sps:$4 sm:$0xff]   ;;  %v3271_v18 = vld [vmem:[#allocation5 + $0x784] ss:$8 sps:$4 sm:$0xff]  }
 0x107   :  { %1969 = vmatprep.subr.bf16.mxu0 %v3196_v19  ;;  %v3296_v19 = vld [vmem:[#allocation7 + $0x10] ss:$8 sps:$4 sm:$0xff]  }
 0x109   :  { %1841 = vmatpush1.bf16.msra.mxu1 %v3191_v20  ;;  %v3301_v20 = vld [vmem:[#allocation7 + $0x24] ss:$8 sps:$4 sm:$0xff]  }
 0x10a   :  { %1970 = vmatpush1.bf16.msra.mxu0 %v3194_v21  ;;  %2282 = vmatprep.subr.bf16.mxu1 %v3295_v15  ;;  %v3269_v21 = vld [vmem:[#allocation5 + $0x780] ss:$8 sps:$4 sm:$0xff]  }
 0x10b   :  { %1982 = vmatprep.subr.bf16.mxu0 %v3199_v22  ;;  %v3274_v22 = vld [vmem:[#allocation5 + $0x794] ss:$8 sps:$4 sm:$0xff]  }
 0x10c   :  { %1843 = vmatmul.mubr.bf16.vlgmr.msra.gmra.mrb[0].mxu1 %v2529_v29  ;;  %v3272_v29 = vld [vmem:[#allocation5 + $0x790] ss:$8 sps:$4 sm:$0xff]  }
 0x10d   :  { %1972 = vmatmul.mubr.bf16.vlgmr.msra.gmra.mrb[0].mxu0 %v2535_v30  ;;  %2283 = vmatpush1.bf16.msra.mxu1 %v3293_v14  ;;  %v3277_v30 = vld [vmem:[#allocation5 + $0x7a4] ss:$8 sps:$4 sm:$0xff]  }
 0x10e   :  { %1983 = vmatpush1.bf16.msra.mxu0 %v3197_v31  ;;  %2014 = vmatprep.mubr.bf16.mxu0 %v2538_v33  ;;  %v3302_v31 = vld [vmem:[#allocation7 + $0x30] ss:$8 sps:$4 sm:$0xff]   ;;  %v3275_v33 = vld [vmem:[#allocation5 + $0x7a0] ss:$8 sps:$4 sm:$0xff]  }
 0x10f   :  { %1984 = vmatprep.subr.bf16.mxu0 %v3202_v32  ;;  %2284 = vmatprep.subr.bf16.mxu1 %v3298_v16  ;;  %v3307_v32 = vld [vmem:[#allocation7 + $0x44] ss:$8 sps:$4 sm:$0xff]  }
 0x111   :  { %2285 = vmatpush1.bf16.msra.mxu1 %v3296_v19 }
 0x112   :  { %1985 = vmatpush1.bf16.msra.mxu0 %v3200_v34  ;;  %2286 = vmatprep.subr.bf16.mxu1 %v3301_v20  ;;  %v3280_v34 = vld [vmem:[#allocation5 + $0x7b4] ss:$8 sps:$4 sm:$0xff]  }
 0x113   :  { %1986 = vmatprep.subr.bf16.mxu0 %v3205_v35  ;;  %v3305_v35 = vld [vmem:[#allocation7 + $0x40] ss:$8 sps:$4 sm:$0xff]  }
 0x115   :  { %2287 = vmatpush1.bf16.msra.mxu1 %v3299_v23 }
 0x116   :  { %1987 = vmatpush1.bf16.msra.mxu0 %v3203_v24  ;;  %2288 = vmatprep.subr.bf16.mxu1 %v3304_v28  ;;  %v3310_v24 = vld [vmem:[#allocation7 + $0x54] ss:$8 sps:$4 sm:$0xff]  }
 0x117   :  { %1988 = vmatprep.subr.bf16.mxu0 %v3208_v25  ;;  %v3278_v25 = vld [vmem:[#allocation5 + $0x7b0] ss:$8 sps:$4 sm:$0xff]  }
 0x119   :  { %2289 = vmatpush1.bf16.msra.mxu1 %v3302_v31 }
 0x11a   :  { %1989 = vmatpush1.bf16.msra.mxu0 %v3206_v26  ;;  %2290 = vmatprep.subr.bf16.mxu1 %v3307_v32  ;;  %v3283_v26 = vld [vmem:[#allocation5 + $0x7c4] ss:$8 sps:$4 sm:$0xff]  }
 0x11b   :  { %1990 = vmatprep.subr.bf16.mxu0 %v3211_v27  ;;  %v3308_v27 = vld [vmem:[#allocation7 + $0x50] ss:$8 sps:$4 sm:$0xff]  }
 0x11d   :  { %2291 = vmatpush1.bf16.msra.mxu1 %v3305_v35 }
 0x11e   :  { %1991 = vmatpush1.bf16.msra.mxu0 %v3209_v36  ;;  %2292 = vmatprep.subr.bf16.mxu1 %v3310_v24  ;;  %v3313_v36 = vld [vmem:[#allocation7 + $0x64] ss:$8 sps:$4 sm:$0xff]  }
 0x11f   :  { %1992 = vmatprep.subr.bf16.mxu0 %v3214_v37  ;;  %v3281_v37 = vld [vmem:[#allocation5 + $0x7c0] ss:$8 sps:$4 sm:$0xff]  }
 0x121   :  { %2293 = vmatpush1.bf16.msra.mxu1 %v3308_v27  ;;  %v3343_v27 = vld [vmem:[#allocation8 + $0x48] sm:$0xff]  }
 0x122   :  { %1993 = vmatpush1.bf16.msra.mxu0 %v3212_v38  ;;  %v3286_v38 = vld [vmem:[#allocation5 + $0x7d4] ss:$8 sps:$4 sm:$0xff]   ;;  %2294 = vmatprep.subr.bf16.mxu1 %v3313_v36  ;;  %v3344_v36 = vld [vmem:[#allocation8 + $0x8] sm:$0xff]  }
 0x123   :  { %1994 = vmatprep.subr.bf16.mxu0 %v3217_v39  ;;  %v3311_v39 = vld [vmem:[#allocation7 + $0x60] ss:$8 sps:$4 sm:$0xff]  }
 0x125   :  { %2295 = vmatpush1.bf16.msra.mxu1 %v3311_v39  ;;  %v3347_v39 = vld [vmem:[#allocation8 + $0x58] sm:$0xff]  }
 0x126   :  { %1995 = vmatpush1.bf16.msra.mxu0 %v3215_v40  ;;  %v3316_v40 = vld [vmem:[#allocation7 + $0x74] ss:$8 sps:$4 sm:$0xff]  }
 0x127   :  { %1996 = vmatprep.subr.bf16.mxu0 %v3220_v41  ;;  %v3284_v41 = vld [vmem:[#allocation5 + $0x7d0] ss:$8 sps:$4 sm:$0xff]   ;;  %2296 = vmatprep.subr.bf16.mxu1 %v3316_v40 }
 0x128   :  { %v3348_v40 = vld [vmem:[#allocation8 + $0x18] sm:$0xff]  }
 0x12a   :  { %1997 = vmatpush1.bf16.msra.mxu0 %v3218_v42  ;;  %v3289_v42 = vld [vmem:[#allocation5 + $0x7e4] ss:$8 sps:$4 sm:$0xff]  }
 0x12b   :  { %1998 = vmatprep.subr.bf16.mxu0 %v3223_v43  ;;  %v3314_v43 = vld [vmem:[#allocation7 + $0x70] ss:$8 sps:$4 sm:$0xff]  }
 0x12c   :  { %2297 = vmatpush1.bf16.msra.mxu1 %v3314_v43  ;;  %v3351_v43 = vld [vmem:[#allocation8 + $0x68] sm:$0xff]  }
 0x12e   :  { %1999 = vmatpush1.bf16.msra.mxu0 %v3221_v44  ;;  %v3319_v44 = vld [vmem:[#allocation7 + $0x84] ss:$8 sps:$4 sm:$0xff]  }
 0x12f   :  { %2000 = vmatprep.subr.bf16.mxu0 %v3226_v45  ;;  %v3287_v45 = vld [vmem:[#allocation5 + $0x7e0] ss:$8 sps:$4 sm:$0xff]   ;;  %2298 = vmatprep.subr.bf16.mxu1 %v3319_v44 }
 0x130   :  { %v3352_v44 = vld [vmem:[#allocation8 + $0x28] sm:$0xff]  }
 0x132   :  { %2001 = vmatpush1.bf16.msra.mxu0 %v3224_v46  ;;  %v3292_v46 = vld [vmem:[#allocation5 + $0x7f4] ss:$8 sps:$4 sm:$0xff]  }
 0x133   :  { %2002 = vmatprep.subr.bf16.mxu0 %v3229_v47  ;;  %v3317_v47 = vld [vmem:[#allocation7 + $0x80] ss:$8 sps:$4 sm:$0xff]  }
 0x134   :  { %2299 = vmatpush1.bf16.msra.mxu1 %v3317_v47  ;;  %v3355_v47 = vld [vmem:[#allocation8 + $0x78] sm:$0xff]  }
 0x136   :  { %2003 = vmatpush1.bf16.msra.mxu0 %v3227_v48  ;;  %v3322_v48 = vld [vmem:[#allocation7 + $0x94] ss:$8 sps:$4 sm:$0xff]  }
 0x137   :  { %2004 = vmatprep.subr.bf16.mxu0 %v3232_v49  ;;  %v3290_v49 = vld [vmem:[#allocation5 + $0x7f0] ss:$8 sps:$4 sm:$0xff]   ;;  %2300 = vmatprep.subr.bf16.mxu1 %v3322_v48 }
 0x138   :  { %v3356_v48 = vld [vmem:[#allocation8 + $0x38] sm:$0xff]  }
 0x13a   :  { %2005 = vmatpush1.bf16.msra.mxu0 %v3230_v50  ;;  %v3320_v50 = vld [vmem:[#allocation7 + $0x90] ss:$8 sps:$4 sm:$0xff]  }
 0x13b   :  { %2006 = vmatprep.subr.bf16.mxu0 %v3235_v51  ;;  %v3325_v51 = vld [vmem:[#allocation7 + $0xa4] ss:$8 sps:$4 sm:$0xff]   ;;  %2301 = vmatpush1.bf16.msra.mxu1 %v3320_v50 }
 0x13c   :  { %2302 = vmatprep.subr.bf16.mxu1 %v3325_v51 }
 0x13e   :  { %2007 = vmatpush1.bf16.msra.mxu0 %v3233_v52  ;;  %v2539_v52 = vcombine.low %v3622_v60, %v3624_v61 }
 0x13f   :  { %2008 = vmatprep.subr.bf16.mxu0 %v3238_v53  ;;  %v3323_v53 = vld [vmem:[#allocation7 + $0xa0] ss:$8 sps:$4 sm:$0xff]  }
 0x140   :  { %2303 = vmatpush1.bf16.msra.mxu1 %v3323_v53 }
 0x142   :  { %2009 = vmatpush1.bf16.msra.mxu0 %v3236_v54  ;;  %v3328_v54 = vld [vmem:[#allocation7 + $0xb4] ss:$8 sps:$4 sm:$0xff]  }
 0x143   :  { %2010 = vmatprep.subr.bf16.mxu0 %v3241_v55  ;;  %v3326_v55 = vld [vmem:[#allocation7 + $0xb0] ss:$8 sps:$4 sm:$0xff]   ;;  %2304 = vmatprep.subr.bf16.mxu1 %v3328_v54 }
 0x144   :  { %2305 = vmatpush1.bf16.msra.mxu1 %v3326_v55 }
 0x146   :  { %2011 = vmatpush1.bf16.msra.mxu0 %v3239_v56  ;;  %v3331_v56 = vld [vmem:[#allocation7 + $0xc4] ss:$8 sps:$4 sm:$0xff]  }
 0x147   :  { %2012 = vmatprep.subr.bf16.mxu0 %v3244_v57  ;;  %v3329_v57 = vld [vmem:[#allocation7 + $0xc0] ss:$8 sps:$4 sm:$0xff]   ;;  %2306 = vmatprep.subr.bf16.mxu1 %v3331_v56 }
 0x148   :  { %2307 = vmatpush1.bf16.msra.mxu1 %v3329_v57 }
 0x14a   :  { %2013 = vmatpush1.bf16.msra.mxu0 %v3242_v58  ;;  %v3334_v58 = vld [vmem:[#allocation7 + $0xd4] ss:$8 sps:$4 sm:$0xff]  }
 0x14b   :  { %2025 = vmatprep.subr.bf16.mxu0 %v3247_v59  ;;  %2308 = vmatprep.subr.bf16.mxu1 %v3334_v58 }
 0x14d   :  { %2015 = vmatmul.mubr.bf16.vlgmr.msra.gmra.mrb[0].mxu0 %v2537_v62  ;;  %v3332_v62 = vld [vmem:[#allocation7 + $0xd0] ss:$8 sps:$4 sm:$0xff]  }
 0x14e   :  { %2026 = vmatpush1.bf16.msra.mxu0 %v3245_v63  ;;  %2057 = vmatprep.mubr.bf16.mxu0 %v2540_v0  ;;  %v3337_v0 = vld [vmem:[#allocation7 + $0xe4] ss:$8 sps:$4 sm:$0xff]  }
 0x14f   :  { %2027 = vmatprep.subr.bf16.mxu0 %v3250_v1  ;;  %2309 = vmatpush1.bf16.msra.mxu1 %v3332_v62  ;;  %v3335_v1 = vld [vmem:[#allocation7 + $0xe0] ss:$8 sps:$4 sm:$0xff]  }
 0x150   :  { %2310 = vmatprep.subr.bf16.mxu1 %v3337_v0 }
 0x152   :  { %2028 = vmatpush1.bf16.msra.mxu0 %v3248_v2  ;;  %v3340_v2 = vld [vmem:[#allocation7 + $0xf4] ss:$8 sps:$4 sm:$0xff]  }
 0x153   :  { %2029 = vmatprep.subr.bf16.mxu0 %v3253_v3  ;;  %2311 = vmatpush1.bf16.msra.mxu1 %v3335_v1  ;;  %v3338_v3 = vld [vmem:[#allocation7 + $0xf0] ss:$8 sps:$4 sm:$0xff]  }
 0x154   :  { %2312 = vmatprep.subr.bf16.mxu1 %v3340_v2 }
 0x156   :  { %2030 = vmatpush1.bf16.msra.mxu0 %v3251_v4  ;;  %v3341_v4 = vld [vmem:[#allocation8 + $0x40] sm:$0xff]  }
 0x157   :  { %2031 = vmatprep.subr.bf16.mxu0 %v3256_v5  ;;  %2313 = vmatpush1.bf16.msra.mxu1 %v3338_v3  ;;  %v354_v5 = vlaneseq }
 0x158   :  { %2845 = vmatprep.subr.bf16.mxu1 %v3341_v4 }
 0x15a   :  { %2032 = vmatpush1.bf16.msra.mxu0 %v3254_v6  ;;  %v3632_v6 = vshrl.u32 %v354_v5, 7 }
 0x15b   :  { %2033 = vmatprep.subr.bf16.mxu0 %v3259_v7 }
 0x15c   :  { %v356_v7 = vsub.s32 0, %v3632_v6 }
 0x15e   :  { %2034 = vmatpush1.bf16.msra.mxu0 %v3257_v8  ;;  %v352_v8 = vld [vmem:[%s3659_s2] sm:$0x3] }
 0x15f   :  { %2035 = vmatprep.subr.bf16.mxu0 %v3262_v9  ;;  %v360_v9 = vsub.s32 1, %v3632_v6 }
 0x162   :  { %2036 = vmatpush1.bf16.msra.mxu0 %v3260_v10  ;;  %v357_v10 = vrot.slane %v352_v8, %v356_v7 }
 0x163   :  { %2037 = vmatprep.subr.bf16.mxu0 %v3265_v11  ;;  %v361_v11 = vrot.slane %v352_v8, %v360_v9 }
 0x166   :  { %2038 = vmatpush1.bf16.msra.mxu0 %v3263_v12 }
 0x167   :  { %2039 = vmatprep.subr.bf16.mxu0 %v3268_v13 }
 0x16a   :  { %2040 = vmatpush1.bf16.msra.mxu0 %v3266_v17 }
 0x16b   :  { %2041 = vmatprep.subr.bf16.mxu0 %v3271_v18 }
 0x16e   :  { %2042 = vmatpush1.bf16.msra.mxu0 %v3269_v21 }
 0x16f   :  { %2043 = vmatprep.subr.bf16.mxu0 %v3274_v22 }
 0x172   :  { %2044 = vmatpush1.bf16.msra.mxu0 %v3272_v29 }
 0x173   :  { %2045 = vmatprep.subr.bf16.mxu0 %v3277_v30 }
 0x176   :  { %2046 = vmatpush1.bf16.msra.mxu0 %v3275_v33 }
 0x177   :  { %2047 = vmatprep.subr.bf16.mxu0 %v3280_v34 }
 0x17a   :  { %2048 = vmatpush1.bf16.msra.mxu0 %v3278_v25 }
 0x17b   :  { %2049 = vmatprep.subr.bf16.mxu0 %v3283_v26  ;;  %v3342_v26 = vld [vmem:[#allocation8] sm:$0xff]  }
 0x17e   :  { %2050 = vmatpush1.bf16.msra.mxu0 %v3281_v37  ;;  %v3345_v37 = vld [vmem:[#allocation8 + $0x50] sm:$0xff]  }
 0x17f   :  { %2051 = vmatprep.subr.bf16.mxu0 %v3286_v38  ;;  %v3346_v38 = vld [vmem:[#allocation8 + $0x10] sm:$0xff]  }
 0x182   :  { %2052 = vmatpush1.bf16.msra.mxu0 %v3284_v41  ;;  %v3349_v41 = vld [vmem:[#allocation8 + $0x60] sm:$0xff]  }
 0x183   :  { %2053 = vmatprep.subr.bf16.mxu0 %v3289_v42  ;;  %v3350_v42 = vld [vmem:[#allocation8 + $0x20] sm:$0xff]  }
 0x186   :  { %2054 = vmatpush1.bf16.msra.mxu0 %v3287_v45  ;;  %v3353_v45 = vld [vmem:[#allocation8 + $0x70] sm:$0xff]  }
 0x187   :  { %2055 = vmatprep.subr.bf16.mxu0 %v3292_v46  ;;  %v3354_v46 = vld [vmem:[#allocation8 + $0x30] sm:$0xff]  }
 0x18a   :  { %2056 = vmatpush1.bf16.msra.mxu0 %v3290_v49  ;;  %v2110_v49 = vld [vmem:[%s3661_s4] sm:$0x3]  ;;  %s3484_s4 = smov [#allocation10]  }
 0x18b   :  { %v2115_v50 = vrot.slane %v2110_v49, %v356_v7  ;;  %v2119_v51 = vrot.slane %v2110_v49, %v360_v9  ;;  %s2511_s26 = sshll.u32 %s3484_s4, 4  ;;  %s2512_s26 = int_to_ptr.vmem [resolvable:$true] %s2511_s26 }
 0x18c   :  { %s3445_s27 = scalar_lea.vmem %s2512_s26, 256  ;;  %p3450_p5 = scmp.lt.s32.totalorder %s2512_s26, %s2512_s26 }
 0x18d   :  { %2058 = vmatmul.mubr.bf16.vlgmr.msra.gmra.mrb[0].mxu0 %v2539_v52  ;;  %p3446_p4 = scmp.ne.s32.totalorder %s2512_s26, %s3445_s27  ;;  %p3451_p6 = scmp.lt.s32.totalorder %s3445_s27, %s3445_s27 }
 0x18f   :  { %p3452_p7 = por %p3451_p6, %p3450_p5 }
 0x191   :  { %p3453_p8 = pnand %p3452_p7, %p3446_p4 }
 0x1df   :  { %v1844_v59 = vpop.f32.mrb[0].mxu1 }
 0x1e0   :  { %v1846_v63 = vpop.f32.mrb[1].mxu1  ;;  %v2867_v12 = vadd.f32 %v1844_v59, %v357_v10 }
 0x1e1   :  { %v1848_v60 = vpop.f32.mrb[2].mxu1  ;;  %v2869_v13 = vadd.f32 %v1846_v63, %v361_v11 }
 0x1e2   :  { %v1850_v61 = vpop.f32.mrb[3].mxu1  ;;  %v2871_v15 = vadd.f32 %v1848_v60, %v357_v10 }
 0x1e3   :  { %v2873_v18 = vadd.f32 %v1850_v61, %v361_v11 }
 0x260   :  { %v2059_v14 = vpop.f32.mrb[0].mxu0 }
 0x261   :  { %v2868_v16 = vadd.f32 %v2867_v12, %v2059_v14  ;;  %v2061_v17 = vpop.f32.mrb[1].mxu0 }
 0x262   :  { %v2870_v19 = vadd.f32 %v2869_v13, %v2061_v17  ;;  %v2063_v20 = vpop.f32.mrb[2].mxu0 }
 0x263   :  { %v2068_v21 = vmax.f32 %v2868_v16, 0.0  ;;  %v2872_v22 = vadd.f32 %v2871_v15, %v2063_v20  ;;  %v2065_v23 = vpop.f32.mrb[3].mxu0 }
 0x264   :  { %v2069_v28 = vmax.f32 %v2870_v19, 0.0  ;;  %v2874_v29 = vadd.f32 %v2873_v18, %v2065_v23 }
 0x265   :  { %v2070_v30 = vmax.f32 %v2872_v22, 0.0  ;;  %v2072_v32 = vmin.f32 %v2068_v21, 6.0 }
 0x266   :  { %v2071_v31 = vmax.f32 %v2874_v29, 0.0  ;;  %v2073_v34 = vmin.f32 %v2069_v28, 6.0 }
 0x267   :  { %v2074_v33 = vmin.f32 %v2070_v30, 6.0 }
 0x268   :  { %v2075_v35 = vmin.f32 %v2071_v31, 6.0 }
 0x269   :  { %v2076_v24 = vpack.c.bf16 %v2074_v33, %v2072_v32 }
 0x26a   :  { %v2077_v25 = vpack.c.bf16 %v2075_v35, %v2073_v34 }
 0x26c   :  { %2314 = vmatprep.mubr.bf16.mxu1 %v2077_v25 }
 0x26d   :  { %2315 = vmatmul.mubr.bf16.vlgmr.msra.gmra.mrb[4].mxu1 %v2076_v24 }
 0x26e   :  { %2846 = vmatpush3.bf16.msra.mxu1 %v3342_v26 }
 0x26f   :  { %2847 = vmatprep.subr.bf16.mxu1 %v3343_v27 }
 0x272   :  { %2848 = vmatpush3.bf16.msra.mxu1 %v3344_v36 }
 0x273   :  { %2849 = vmatprep.subr.bf16.mxu1 %v3345_v37 }
 0x276   :  { %2850 = vmatpush3.bf16.msra.mxu1 %v3346_v38 }
 0x277   :  { %2851 = vmatprep.subr.bf16.mxu1 %v3347_v39 }
 0x27a   :  { %2852 = vmatpush3.bf16.msra.mxu1 %v3348_v40 }
 0x27b   :  { %2853 = vmatprep.subr.bf16.mxu1 %v3349_v41 }
 0x27e   :  { %2854 = vmatpush3.bf16.msra.mxu1 %v3350_v42 }
 0x27f   :  { %2855 = vmatprep.subr.bf16.mxu1 %v3351_v43 }
 0x282   :  { %2856 = vmatpush3.bf16.msra.mxu1 %v3352_v44 }
 0x283   :  { %2857 = vmatprep.subr.bf16.mxu1 %v3353_v45 }
 0x286   :  { %2858 = vmatpush3.bf16.msra.mxu1 %v3354_v46 }
 0x287   :  { %2859 = vmatprep.subr.bf16.mxu1 %v3355_v47 }
 0x28a   :  { %2860 = vmatpush3.bf16.msra.mxu1 %v3356_v48 }
 0x340   :  { %v2316_v52 = vpop.f32.mrb[4].mxu1 }
 0x341   :  { %v2317_v53 = vadd.f32 %v2316_v52, %v2115_v50  ;;  %v2318_v54 = vpop.f32.mrb[5].mxu1 }
 0x342   :  { %v2319_v55 = vadd.f32 %v2318_v54, %v2119_v51  ;;  %v2320_v56 = vpop.f32.mrb[6].mxu1 }
 0x343   :  { %v2325_v57 = vmax.f32 %v2317_v53, 0.0  ;;  %v2321_v58 = vadd.f32 %v2320_v56, %v2115_v50  ;;  %v2322_v59 = vpop.f32.mrb[7].mxu1 }
 0x344   :  { %v2326_v62 = vmax.f32 %v2319_v55, 0.0  ;;  %v2323_v63 = vadd.f32 %v2322_v59, %v2119_v51 }
 0x345   :  { %v2327_v60 = vmax.f32 %v2321_v58, 0.0  ;;  %v2329_v0 = vmin.f32 %v2325_v57, 6.0 }
 0x346   :  { %v2328_v61 = vmax.f32 %v2323_v63, 0.0  ;;  %v2330_v2 = vmin.f32 %v2326_v62, 6.0 }
 0x347   :  { %v2331_v1 = vmin.f32 %v2327_v60, 6.0 }
 0x348   :  { %v2332_v3 = vmin.f32 %v2328_v61, 6.0 }
 0x349   :  { %v2333_v4 = vpack.c.bf16 %v2331_v1, %v2329_v0 }
 0x34a   :  { %v2334_v5 = vpack.c.bf16 %v2332_v3, %v2330_v2 }
 0x34c   :  { %2495 = vmatprep.mubr.bf16.mxu1 %v2334_v5 }
 0x34d   :  { %2496 = vmatmul.mubr.bf16.vlgmr.msra.gmra.mrb[8].mxu1 %v2333_v4 }
 0x420   :  { %v2861_v6 = vpop.f32.mrb[8].mxu1 }
 0x421   :  { %v2862_v7 = vpop.f32.mrb[9].mxu1 }
 0x422   :  { %v2863_v8 = vadd.f32 %v2862_v7, %v2861_v6  ;;  %v2864_v9 = vpop.f32.mrb[10].mxu1 }
 0x423   :  { %v2865_v10 = vpop.f32.mrb[11].mxu1 }
 0x424   :  { %2504 = vst [vmem:[#allocation10] sm:$0xff] %v2863_v8  ;;  %v2866_v11 = vadd.f32 %v2865_v10, %v2864_v9 }
 0x426   :  { %2505 = vst [vmem:[#allocation10 + $0x8] sm:$0xff] %v2866_v11 }
 0x427   :  { %3456 = shalt.err (!%p3453_p8)
}
 0x428   :  { %s3457_s30 = scalar_lea.hbm %s3663_s6, 256 }
 0x429   :  { %p3458_p9 = scmp.ne.s32.totalorder %s3663_s6, %s3457_s30  ;;  %p3461_p10 = scmp.lt.u32.totalorder %s3457_s30, %s3663_s6 }
 0x42b   :  { %p3463_p11 = pnand %p3461_p10, %p3458_p9 }
 0x42d   :  { %3466 = shalt.err (!%p3463_p11)
}
 0x42e   :  { %2517 = dma.vmem_to_hbm [thread:$0]  %s2512_s26, 256, %s3663_s6, [#allocation4], %s3476_s7, %s3476_s7, %s3477_s8  }
 0x42f   :  { %3473 = dma.done.wait [#allocation4], 256  }
 0x430   :  { %3474 = vsyncadd [#allocation4], 4294967040 }
 0x431   :  { %2521 = vsyncpa [#allocation3], 1 }
 0x432   :  { %2522 = vsyncpa [#allocation6], 1 }
 0x433   :  { %2523 = vsyncpa [#allocation9], 1 }
 0x434   :  { %2524 = vsyncpa [#allocation4], 1 }

</bundles_post_ra>
